<compile_context>
chip_gen: v7x
topology: tpu7x:2x2x1
jax: 0.10.0
libtpu: 0.0.40
codegen_flags: <defaults>
</compile_context>

<pallas_src>
import jax
import jax.numpy as jnp
from jax import lax
from jax.experimental import pallas as pl
from jax.experimental.pallas import tpu as pltpu


_LANE = 128                       # lane width / token-tile granularity
_N_INFLIGHT = 8                   # concurrent row DMAs on the HBM-gather path
_ONEHOT_MAX_VOCAB = 4096          # one-hot MXU gather vs per-row loop switch
_MXU_PAD = 256                    # pad vocab to an MXU-friendly multiple
_IDS_SMEM_BUDGET = 128 * 1024     # ids bytes per pallas_call (SMEM prefetch paths)


def _round_up(x: int, m: int) -> int:
    return ((x + m - 1) // m) * m


def _cdiv(a: int, b: int) -> int:
    return (a + b - 1) // b


def _vmem_capacity_bytes(default: int = 128 * 1024 * 1024) -> int:
    """Physical VMEM per TensorCore (128 MiB v5e/v6e, 64 MiB v7x)."""
    try:
        info = pltpu.get_tpu_info()
        for name in ("vmem_capacity_bytes", "vmem_size_bytes", "vmem_bytes"):
            val = getattr(info, name, None)
            if val is None:
                continue
            try:
                v = int(val)
            except (TypeError, ValueError):
                continue
            if v > 0:
                return v
    except Exception:
        pass
    return default


# ----------------------------------------------------------------------------
# Kernels
# ----------------------------------------------------------------------------
def _onehot_gather_kernel(ids_ref, table_ref, out_ref):
    """Resident table, small vocab: gather TT rows with a one-hot MXU matmul."""
    # ids_ref:   VMEM (TT, 1) int32
    # table_ref: VMEM (Vp, Dp) — single-buffered, constant index_map
    # out_ref:   VMEM (TT, Dp)
    tt = out_ref.shape[0]
    vp = table_ref.shape[0]
    col = lax.broadcasted_iota(jnp.int32, (tt, vp), 1)
    onehot = (col == ids_ref[...]).astype(table_ref.dtype)
    # One-hot LHS => result is bit-exact with a gather; for f32 tables force
    # full-precision MXU passes so values are not truncated to bf16.
    prec = (lax.Precision.HIGHEST if table_ref.dtype == jnp.float32
            else lax.Precision.DEFAULT)
    acc = jnp.dot(onehot, table_ref[...],
                  preferred_element_type=jnp.float32, precision=prec)
    out_ref[...] = acc.astype(out_ref.dtype)


def _loop_gather_kernel(ids_ref, table_ref, out_ref):
    """Resident table, large vocab: per-row VMEM copies (unrolled)."""
    # ids_ref:   SMEM (chunk_tokens,) int32 (scalar prefetch)
    # table_ref: VMEM (V, Dk) — single-buffered, constant index_map
    # out_ref:   VMEM (TT, Dk)
    tt = out_ref.shape[0]
    base = pl.program_id(0) * tt

    def body(t, carry):
        out_ref[t, :] = table_ref[ids_ref[base + t], :]
        return carry

    lax.fori_loop(0, tt, body, 0, unroll=8)


def _hbm_gather_kernel(ids_ref, table_hbm, out_ref, sem):
    """Table in HBM: per-tile row gather with _N_INFLIGHT DMAs in flight."""
    # ids_ref:   SMEM (chunk_tokens,) int32 (scalar prefetch)
    # table_hbm: HBM/ANY (V, D)
    # out_ref:   VMEM (TT, D) — rows are written directly by the DMA engine
    # sem:       DMA semaphores (_N_INFLIGHT,)
    tt = out_ref.shape[0]
    base = pl.program_id(0) * tt

    @pl.loop(0, tt)
    def _issue(t):
        slot = t & (_N_INFLIGHT - 1)

        @pl.when(t >= _N_INFLIGHT)
        def _():
            # Free this slot (its previous row copy) before reusing it.
            pltpu.make_async_copy(table_hbm.at[0], out_ref.at[0],
                                  sem.at[slot]).wait()

        pltpu.make_async_copy(table_hbm.at[ids_ref[base + t]],
                              out_ref.at[t], sem.at[slot]).start()

    @pl.loop(0, _N_INFLIGHT)
    def _drain(s):
        pltpu.make_async_copy(table_hbm.at[0], out_ref.at[0], sem.at[s]).wait()


# ----------------------------------------------------------------------------
# pallas_call wrappers (one grid step per token tile on every path)
# ----------------------------------------------------------------------------
def _call_resident_onehot(ids_chunk, table_pad, tt, vmem_limit, cost):
    ct = ids_chunk.shape[0]
    vp, dp = table_pad.shape
    ids2 = ids_chunk.reshape(ct, 1)
    return pl.pallas_call(
        _onehot_gather_kernel,
        out_shape=jax.ShapeDtypeStruct((ct, dp), table_pad.dtype),
        grid=(ct // tt,),
        in_specs=[pl.BlockSpec((tt, 1), lambda i: (i, 0)),
                  pl.BlockSpec((vp, dp), lambda i: (0, 0),
                               pipeline_mode=pl.Buffered(1))],
        out_specs=pl.BlockSpec((tt, dp), lambda i: (i, 0)),
        compiler_params=pltpu.CompilerParams(
            dimension_semantics=("parallel",), vmem_limit_bytes=vmem_limit),
        cost_estimate=cost,
    )(ids2, table_pad)


def _call_resident_loop(ids_chunk, table_p, tt, vmem_limit, cost):
    ct = ids_chunk.shape[0]
    vv, dk = table_p.shape
    return pl.pallas_call(
        _loop_gather_kernel,
        out_shape=jax.ShapeDtypeStruct((ct, dk), table_p.dtype),
        grid_spec=pltpu.PrefetchScalarGridSpec(
            num_scalar_prefetch=1,
            grid=(ct // tt,),
            in_specs=[pl.BlockSpec((vv, dk), lambda i, ids: (0, 0),
                                   pipeline_mode=pl.Buffered(1))],
            out_specs=pl.BlockSpec((tt, dk), lambda i, ids: (i, 0))),
        compiler_params=pltpu.CompilerParams(
            dimension_semantics=("parallel",), vmem_limit_bytes=vmem_limit),
        cost_estimate=cost,
    )(ids_chunk, table_p)


def _call_hbm(ids_chunk, table, tt, vmem_limit, cost):
    ct = ids_chunk.shape[0]
    _, d = table.shape
    return pl.pallas_call(
        _hbm_gather_kernel,
        out_shape=jax.ShapeDtypeStruct((ct, d), table.dtype),
        grid_spec=pltpu.PrefetchScalarGridSpec(
            num_scalar_prefetch=1,
            grid=(ct // tt,),
            in_specs=[pl.BlockSpec(memory_space=pl.ANY)],
            out_specs=pl.BlockSpec((tt, d), lambda i, ids: (i, 0)),
            scratch_shapes=[pltpu.SemaphoreType.DMA((_N_INFLIGHT,))]),
        compiler_params=pltpu.CompilerParams(
            dimension_semantics=("parallel",), vmem_limit_bytes=vmem_limit),
        cost_estimate=cost,
    )(ids_chunk, table)


# ----------------------------------------------------------------------------
# Public wrapper
# ----------------------------------------------------------------------------
def embedding_lookup(input_ids: jax.Array, table: jax.Array, *,
                     tokens_per_tile: int | None = None,
                     force_path: str | None = None,      # None|"resident"|"hbm"
                     gather_impl: str | None = None) -> jax.Array:  # None|"onehot"|"loop"
    """Forward of torch.nn.Embedding: returns table[input_ids] with shape ids.shape+(D,)."""
    V, D = table.shape
    ids_shape = tuple(input_ids.shape)
    T = 1
    for s in ids_shape:
        T *= int(s)
    T = max(T, 1)

    itemsize = jnp.dtype(table.dtype).itemsize
    ids_flat = jnp.clip(jnp.reshape(input_ids, (T,)).astype(jnp.int32), 0, V - 1)

    vmem_cap = _vmem_capacity_bytes()
    budget = int(0.80 * vmem_cap)

    # ---- gather implementation: static dispatch on shapes (no try/except) ----
    if gather_impl is None:
        gather_impl = "onehot" if V <= _ONEHOT_MAX_VOCAB else "loop"
    v_pad = _round_up(V, _MXU_PAD) if gather_impl == "onehot" else V
    row_bytes = D * itemsize

    # ---- token tile size: ~4 MiB output tile, multiple of 128 lanes ----
    if tokens_per_tile is not None:
        tt = _round_up(max(int(tokens_per_tile), 1), _LANE)
    else:
        tt = _round_up(max((4 << 20) // max(row_bytes, 1), 1), _LANE)
        tt = max(_LANE, min(tt, 1024))
        tt = min(tt, _round_up(T, _LANE))
        # v7x megacore: keep >= 2 tiles when there is enough work to split.
        if T > _LANE and _round_up(T, tt) == tt:
            tt = max(_LANE, _round_up(_cdiv(T, 2), _LANE))
        if gather_impl == "onehot":
            # Bound the (TT, Vp) one-hot intermediate to ~4 MiB.
            cap = max(_LANE, (((4 << 20) // max(v_pad * 4, 1)) // _LANE) * _LANE)
            tt = min(tt, cap)

    def _resident_need(tt_, d_):
        need = v_pad * d_ * itemsize          # table panel (single-buffered)
        need += 2 * tt_ * d_ * itemsize       # double-buffered output tile
        need += 2 * tt_ * 4                   # ids tile
        if gather_impl == "onehot":
            need += 2 * tt_ * v_pad * 4       # iota + one-hot intermediates
            need += tt_ * d_ * 4              # f32 accumulator
        return need

    # ---- path selection (static) ----
    panels = 1
    if force_path == "hbm":
        path = "hbm"
    else:
        tt_fit = tt
        while tt_fit > _LANE and _resident_need(tt_fit, D) + (2 << 20) > budget:
            tt_fit -= _LANE
        if _resident_need(tt_fit, D) + (2 << 20) <= budget:
            path, tt = "resident", tt_fit
        else:
            path = "hbm"
            for p in (2, 4, 8):   # panelled resident: split D into column panels
                dp = D // p
                if D % p == 0 and dp % _LANE == 0 and \
                        _resident_need(tt_fit, dp) + (2 << 20) <= budget:
                    path, panels, tt = "resident", p, tt_fit
                    break
            if force_path == "resident" and path != "resident":
                raise ValueError("embedding table does not fit the resident VMEM path")

    # ---- pad tokens to whole tiles (padded ids read row 0, sliced off) ----
    t_pad = _round_up(T, tt)
    if t_pad > T:
        ids_flat = jnp.pad(ids_flat, (0, t_pad - T))
    num_tiles = t_pad // tt

    # ---- bound the ids SMEM footprint per pallas_call (scalar-prefetch paths) ----
    if path == "resident" and gather_impl == "onehot":
        chunk_tiles = num_tiles                     # ids travel through VMEM
    else:
        chunk_tiles = max(1, _IDS_SMEM_BUDGET // (4 * tt))
    chunk_tiles = min(chunk_tiles, num_tiles)

    # ---- prepare resident table panels (padded vocab / uint32 packing) ----
    panel_tables = []
    pack = 1
    if path == "resident":
        tbl = table
        if gather_impl == "onehot" and v_pad != V:
            tbl = jnp.pad(table, ((0, v_pad - V), (0, 0)))
        dpan = D // panels
        panel_tables = ([tbl] if panels == 1 else
                        [tbl[:, p * dpan:(p + 1) * dpan] for p in range(panels)])
        if gather_impl == "loop" and itemsize < 4 and dpan % (4 // itemsize) == 0:
            # Bit-pack sub-32-bit rows into uint32 so dynamic row indexing in
            # the loop kernel stays on 32-bit layouts (no packed-dtype shifts).
            pack = 4 // itemsize
            panel_tables = [
                lax.bitcast_convert_type(
                    p_.reshape(p_.shape[0], dpan // pack, pack), jnp.uint32)
                for p_ in panel_tables]

    # ---- run ----
    chunk_outs = []
    for c in range(0, num_tiles, chunk_tiles):
        n_t = min(chunk_tiles, num_tiles - c)
        ids_c = ids_flat[c * tt:(c + n_t) * tt]
        if path == "resident":
            panel_outs = []
            for ptbl in panel_tables:
                dp_out = ptbl.shape[1] * (pack if gather_impl == "loop" else 1)
                need = _resident_need(tt, dp_out)
                vmem_limit = int(min(max(need + (4 << 20), 32 << 20),
                                     0.95 * vmem_cap))
                tbl_bytes = int(ptbl.size) * jnp.dtype(ptbl.dtype).itemsize
                cost = pl.CostEstimate(
                    flops=(2 * n_t * tt * v_pad * dp_out
                           if gather_impl == "onehot" else 0),
                    transcendentals=0,
                    bytes_accessed=int(tbl_bytes + n_t * tt * dp_out * itemsize
                                       + n_t * tt * 4))
                if gather_impl == "onehot":
                    out_p = _call_resident_onehot(ids_c, ptbl, tt, vmem_limit, cost)
                else:
                    out_p = _call_resident_loop(ids_c, ptbl, tt, vmem_limit, cost)
                    if pack > 1:
                        out_p = lax.bitcast_convert_type(out_p, table.dtype)
                        out_p = out_p.reshape(out_p.shape[0], dp_out)
                panel_outs.append(out_p)
            chunk_outs.append(panel_outs[0] if panels == 1
                              else jnp.concatenate(panel_outs, axis=-1))
        else:
            need = 2 * tt * D * itemsize + _N_INFLIGHT * row_bytes
            vmem_limit = int(min(max(need + (4 << 20), 32 << 20), 0.95 * vmem_cap))
            cost = pl.CostEstimate(
                flops=0, transcendentals=0,
                bytes_accessed=int(2 * n_t * tt * D * itemsize + n_t * tt * 4))
            chunk_outs.append(_call_hbm(ids_c, table, tt, vmem_limit, cost))

    out_flat = (chunk_outs[0] if len(chunk_outs) == 1
                else jnp.concatenate(chunk_outs, axis=0))
    return out_flat[:T].reshape(*ids_shape, D)


# ----------------------------------------------------------------------------
# Demo / correctness checks
# ----------------------------------------------------------------------------
if __name__ == "__main__":
    key = jax.random.PRNGKey(0)
    k_w1, k_ids1, k_w2, k_ids2 = jax.random.split(key, 4)

    # --- Test 1: spec-sized module (vocab=32, dim=128), batch=2, seq=8, f32.
    V1, D1, B1, S1 = 32, 128, 2, 8
    w1 = jax.random.normal(k_w1, (V1, D1), dtype=jnp.float32)   # nn.Embedding ~ N(0,1)
    ids1 = jax.random.randint(k_ids1, (B1, S1), 0, V1, dtype=jnp.int32)
    ref1 = jnp.take(w1, ids1, axis=0)
    out1 = jax.block_until_ready(embedding_lookup(ids1, w1))
    assert out1.shape == (B1, S1, D1) and out1.dtype == w1.dtype
    assert jnp.array_equal(out1, ref1), "one-hot resident path mismatch (f32)"

    # --- Test 2: multi-tile resident one-hot path, bf16 table.
    V2, D2, B2, S2 = 512, 256, 4, 96
    w2 = jax.random.normal(k_w2, (V2, D2), dtype=jnp.float32).astype(jnp.bfloat16)
    ids2 = jax.random.randint(k_ids2, (B2, S2), 0, V2, dtype=jnp.int32)
    ref2 = jnp.take(w2, ids2, axis=0)
    out2 = jax.block_until_ready(embedding_lookup(ids2, w2))
    assert out2.shape == (B2, S2, D2) and out2.dtype == jnp.bfloat16
    assert jnp.array_equal(out2, ref2), "one-hot resident path mismatch (bf16)"

    # --- Test 3: forced per-row loop gather (the large-vocab resident path).
    out3 = jax.block_until_ready(embedding_lookup(ids2, w2, gather_impl="loop"))
    assert jnp.array_equal(out3, ref2), "loop resident path mismatch"

    # --- Test 4: forced HBM row-gather path (used when the table exceeds VMEM).
    out4 = jax.block_until_ready(embedding_lookup(ids2, w2, force_path="hbm"))
    assert jnp.array_equal(out4, ref2), "HBM gather path mismatch"

    # --- Test 5: under jit (dispatch is static; no exception-driven fallback).
    out5 = jax.block_until_ready(jax.jit(lambda i: embedding_lookup(i, w1))(ids1))
    assert jnp.array_equal(out5, ref1), "jit path mismatch"

    print("KERNEL_OK")
</pallas_src>

<mosaic_0001>
module attributes {stable_mosaic.version = 11 : i64} {
  func.func @_onehot_gather_kernel(%arg0: i32, %arg1: memref<128x1xi32, #tpu.memory_space<vmem>>, %arg2: memref<256x128xf32, #tpu.memory_space<vmem>>, %arg3: memref<128x128xf32, #tpu.memory_space<vmem>>) attributes {dimension_semantics = [#tpu.dimension_semantics<parallel>], iteration_bounds = array<i64: 1>, scalar_prefetch = 0 : i64, scratch_operands = 0 : i64, tpu.core_type = #tpu.core_type<tc>, window_params = [{transform_indices = @transform_0, window_bounds = array<i64: 128, 1>}, {pipeline_mode = #tpu.pipeline_mode<synchronous>, transform_indices = @transform_1, window_bounds = array<i64: 256, 128>}, {transform_indices = @transform_2, window_bounds = array<i64: 128, 128>}]} {
    %0 = tpu.iota {dimensions = array<i32: 1>} : vector<128x256xi32>
    %c0 = arith.constant 0 : index
    %c0_0 = arith.constant 0 : index
    %1 = vector.load %arg1[%c0, %c0_0] : memref<128x1xi32, #tpu.memory_space<vmem>>, vector<128x1xi32>
    %2 = vector.broadcast %1 : vector<128x1xi32> to vector<128x256xi32>
    %3 = arith.cmpi eq, %0, %2 : vector<128x256xi32>
    %4 = arith.extui %3 : vector<128x256xi1> to vector<128x256xi32>
    %5 = arith.sitofp %4 : vector<128x256xi32> to vector<128x256xf32>
    %c0_1 = arith.constant 0 : index
    %c0_2 = arith.constant 0 : index
    %6 = vector.load %arg2[%c0_1, %c0_2] : memref<256x128xf32, #tpu.memory_space<vmem>>, vector<256x128xf32>
    %cst = arith.constant dense<0.000000e+00> : vector<128x128xf32>
    %7 = tpu.matmul %5, %6, %cst {dimension_numbers = #tpu.dot_dimension_numbers<[1], [0], [0], [1], [0, 0, 1, 1], [], []>, precision = #tpu.contract_precision<fp32>} : vector<128x256xf32>, vector<256x128xf32>, vector<128x128xf32> -> vector<128x128xf32>
    %c0_3 = arith.constant 0 : index
    %c0_4 = arith.constant 0 : index
    %8 = vector.load %arg3[%c0_3, %c0_4] : memref<128x128xf32, #tpu.memory_space<vmem>>, vector<128x128xf32>
    tpu.vector_store %arg3[%c0_3, %c0_4], %7 {strides = array<i32>} : memref<128x128xf32, #tpu.memory_space<vmem>>, vector<128x128xf32>,
    return
  }
  func.func @transform_0(%arg0: i32) -> (i32, i32) {
    %c0_i32 = arith.constant 0 : i32
    %c0_i32_0 = arith.constant 0 : i32
    return %arg0, %c0_i32 : i32, i32
  }
  func.func @transform_1(%arg0: i32) -> (i32, i32) {
    %c0_i32 = arith.constant 0 : i32
    %c0_i32_0 = arith.constant 0 : i32
    %c0_i32_1 = arith.constant 0 : i32
    return %c0_i32, %c0_i32_0 : i32, i32
  }
  func.func @transform_2(%arg0: i32) -> (i32, i32) {
    %c0_i32 = arith.constant 0 : i32
    %c0_i32_0 = arith.constant 0 : i32
    return %arg0, %c0_i32 : i32, i32
  }
}

</mosaic_0001>

<bundles_post_ra>
// kernel: tpu_custom_call.1
= control target key start
LH: loop header
LB: loop body
LE: loop exit
PB: predicated region body
PF: predicated region fallthrough
CT: control target
= control target key end

     0   :  { %7 = vsyncpa [#allocation3], 0  ;;  %s4479_s0 = inlined_call_operand.vmem [shape: s32[128,1], index: 0, kind: input, shape index: {}]   ;;  %s4480_s1 = inlined_call_operand.hbm [shape: f32[256,128], index: 1, kind: input, shape index: {}]   ;;  %s4481_s2 = inlined_call_operand.hbm [shape: f32[128,128], index: 2, kind: output, shape index: {}]  }
   0x1   :  { %8 = vsyncpa [#allocation4], 0  ;;  %s2813_s9 = smov [#allocation2]   ;;  %s2765_s13 = scalar_lea.hbm %s4480_s1, 4096 }
   0x2   :  { %s16_s10 = sshll.u32 %s2813_s9, 4  ;;  %p2766_p0 = scmp.ne.s32.totalorder %s4480_s1, %s2765_s13  ;;  %s17_s10 = int_to_ptr.vmem [resolvable:$true] %s16_s10 }
   0x3   :  { %p2769_p1 = scmp.lt.u32.totalorder %s2765_s13, %s4480_s1 }
   0x5   :  { %p2771_p2 = pnand %p2769_p1, %p2766_p0 }
   0x7   :  { %2774 = shalt.err (!%p2771_p2)
}
   0x8   :  { %s2775_s18 = scalar_lea.vmem %s17_s10, 4096  ;;  %p2780_p4 = scmp.lt.s32.totalorder %s17_s10, %s17_s10 }
   0x9   :  { %p2776_p3 = scmp.ne.s32.totalorder %s17_s10, %s2775_s18  ;;  %p2781_p5 = scmp.lt.s32.totalorder %s2775_s18, %s2775_s18 }
   0xb   :  { %p2782_p6 = por %p2781_p5, %p2780_p4 }
   0xd   :  { %p2783_p7 = pnand %p2782_p6, %p2776_p3 }
   0xf   :  { %2786 = shalt.err (!%p2783_p7)
}
  0x10   :  { %s2814_s19 = smov 128   ;;  %s2815_s20 = smov 8  }
  0x11   :  { %22 = dma.hbm_to_vmem [thread:$0]  %s4480_s1, 4096, %s17_s10, [#allocation3], %s2814_s19, %s2814_s19, %s2815_s20  }
  0x12   :  { %2809 = dma.done.wait [#allocation3], 4096  }
  0x13   :  { %2810 = vsyncadd [#allocation3], 4294963200  ;;  %v2816_v0 = vmov 0   ;;  %v31_v1 = vld [vmem:[%s4479_s0 + $0x10] sm:$0xff]  ;;  %v29_v2 = vld [vmem:[%s4479_s0] sm:$0xff] }
  0x14   :  { %2764 = vset.pattern.permute.xlu1 %v2816_v0  ;;  %2763 = vset.pattern.permute.xlu0 %v2816_v0  ;;  %v32_v3 = vld [vmem:[%s4479_s0 + $0x18] sm:$0xff]  ;;  %v30_v4 = vld [vmem:[%s4479_s0 + $0x8] sm:$0xff]  ;;  %v33_v6 = vld [vmem:[%s4479_s0 + $0x20] sm:$0xff] }
  0x15   :  { %52 = vperm.xlu1 %2764, %v31_v1   ;;  %46 = vperm.xlu0 %2763, %v29_v2   ;;  %v34_v5 = vld [vmem:[%s4479_s0 + $0x28] sm:$0xff]  ;;  %v205_v7 = vld [vmem:[#allocation2 + $0x80] sm:$0xff]  ;;  %v2872_v13 = vld [vmem:[#allocation2 + $0x90] sm:$0xff] }
  0x16   :  { %v206_v8 = vld [vmem:[#allocation2 + $0x88] sm:$0xff]  ;;  %v270_v9 = vand.u32 4294901760, %v205_v7  ;;  %v2868_v11 = vld [vmem:[#allocation2] sm:$0xff]  ;;  %v2876_v16 = vld [vmem:[#allocation2 + $0x98] sm:$0xff]  ;;  %v276_v17 = vand.u32 4294901760, %v2872_v13 }
  0x17   :  { %v273_v10 = vand.u32 4294901760, %v206_v8  ;;  %v2870_v12 = vld [vmem:[#allocation2 + $0x8] sm:$0xff]  ;;  %v222_v14 = vand.u32 4294901760, %v2868_v11  ;;  %v2879_v18 = vld [vmem:[#allocation2 + $0x10] sm:$0xff]  ;;  %v2881_v19 = vld [vmem:[#allocation2 + $0x18] sm:$0xff]  ;;  %v279_v22 = vand.u32 4294901760, %v2876_v16 }
  0x18   :  { %v225_v15 = vand.u32 4294901760, %v2870_v12  ;;  %v2883_v20 = vsub.f32 %v205_v7, %v270_v9  ;;  %v228_v23 = vand.u32 4294901760, %v2879_v18  ;;  %v2902_v26 = vsub.f32 %v2872_v13, %v276_v17  ;;  %v36_v28 = vld [vmem:[%s4479_s0 + $0x38] sm:$0xff]  ;;  %v35_v29 = vld [vmem:[%s4479_s0 + $0x30] sm:$0xff]  ;;  %v38_v42 = vld [vmem:[%s4479_s0 + $0x48] sm:$0xff] }
  0x19   :  { %55 = vperm.xlu1 %2764, %v32_v3   ;;  %49 = vperm.xlu0 %2763, %v30_v4   ;;  %v2885_v21 = vsub.f32 %v206_v8, %v273_v10  ;;  %v2892_v24 = vsub.f32 %v2868_v11, %v222_v14  ;;  %v231_v27 = vand.u32 4294901760, %v2881_v19  ;;  %v2916_v32 = vsub.f32 %v2876_v16, %v279_v22  ;;  %v37_v47 = vld [vmem:[%s4479_s0 + $0x40] sm:$0xff]  ;;  %v2963_v53 = vld [vmem:[#allocation2 + $0xa8] sm:$0xff]  ;;  %v2976_v4 = vld [vmem:[#allocation2 + $0xb0] sm:$0xff] }
  0x1a   :  { %v2897_v25 = vsub.f32 %v2870_v12, %v225_v15  ;;  %v4507_v30 = vand.u32 4294901760, %v2883_v20  ;;  %v2921_v33 = vsub.f32 %v2879_v18, %v228_v23  ;;  %v4498_v36 = vand.u32 4294901760, %v2902_v26  ;;  %v2961_v52 = vld [vmem:[#allocation2 + $0xa0] sm:$0xff]  ;;  %v2970_v59 = vld [vmem:[#allocation2 + $0x28] sm:$0xff]  ;;  %v39_v7 = vld [vmem:[%s4479_s0 + $0x50] sm:$0xff] }
  0x1b   :  { %v4504_v31 = vand.u32 4294901760, %v2885_v21  ;;  %4613 = vst [vmem:[#allocation9_spill] sm:$0xff] %v2916_v32  ;;  %v4502_v34 = vand.u32 4294901760, %v2892_v24  ;;  %v2929_v37 = vsub.f32 %v2881_v19, %v231_v27  ;;  %v4497_v40 = vand.u32 4294901760, %v2916_v32  ;;  %v2968_v58 = vld [vmem:[#allocation2 + $0x20] sm:$0xff]  ;;  %v3026_v16 = vld [vmem:[#allocation2 + $0x38] sm:$0xff] }
  0x1c   :  { %4612 = vst [vmem:[#allocation8_spill] sm:$0xff] %v2897_v25  ;;  %4614 = vst [vmem:[#allocation10_spill] sm:$0xff] %v2921_v33  ;;  %v4499_v35 = vand.u32 4294901760, %v2897_v25  ;;  %v674_v38 = vsub.f32 %v2883_v20, %v4507_v30  ;;  %v4496_v41 = vand.u32 4294901760, %v2921_v33  ;;  %v688_v45 = vsub.f32 %v2902_v26, %v4498_v36 }
  0x1d   :  { %61 = vperm.xlu1 %2764, %v34_v5   ;;  %58 = vperm.xlu0 %2763, %v33_v6   ;;  %4615 = vst [vmem:[#allocation11_spill] sm:$0xff] %v2929_v37  ;;  %v681_v39 = vsub.f32 %v2885_v21, %v4504_v31  ;;  %v562_v43 = vsub.f32 %v2892_v24, %v4502_v34  ;;  %v4494_v46 = vand.u32 4294901760, %v2929_v37  ;;  %v282_v2 = vand.u32 4294901760, %v2961_v52  ;;  %v2978_v5 = vld [vmem:[#allocation2 + $0xb8] sm:$0xff] }
  0x1e   :  { %v569_v44 = vsub.f32 %v2897_v25, %v4499_v35  ;;  %v675_v48 = vand.u32 4294901760, %v674_v38  ;;  %v695_v50 = vsub.f32 %v2916_v32, %v4497_v40  ;;  %v576_v51 = vsub.f32 %v2921_v33, %v4496_v41  ;;  %v40_v6 = vld [vmem:[%s4479_s0 + $0x58] sm:$0xff]  ;;  %v202_v40 = vld [vmem:[#allocation2 + $0x68] sm:$0xff] }
  0x1f   :  { %v682_v49 = vand.u32 4294901760, %v681_v39  ;;  %v563_v54 = vand.u32 4294901760, %v562_v43  ;;  %v689_v56 = vand.u32 4294901760, %v688_v45  ;;  %v583_v57 = vsub.f32 %v2929_v37, %v4494_v46  ;;  %v42_v45 = vld [vmem:[%s4479_s0 + $0x68] sm:$0xff]  ;;  %v3206_v46 = vld [vmem:[#allocation2 + $0x60] sm:$0xff] }
  0x20   :  { %v570_v55 = vand.u32 4294901760, %v569_v44  ;;  %v696_v61 = vand.u32 4294901760, %v695_v50  ;;  %v577_v62 = vand.u32 4294901760, %v576_v51  ;;  %v2972_v63 = vpack.c.bf16 %v273_v10, %v270_v9 }
  0x21   :  { %67 = vperm.xlu1 %2764, %v36_v28   ;;  %64 = vperm.xlu0 %2763, %v35_v29   ;;  %v2596_v60 = vpack.c.bf16 %v682_v49, %v675_v48  ;;  %v584_v1 = vand.u32 4294901760, %v583_v57  ;;  %v285_v3 = vand.u32 4294901760, %v2963_v53  ;;  %v2991_v9 = vpack.c.bf16 %v225_v15, %v222_v14  ;;  %v2995_v29 = vld [vmem:[#allocation2 + $0x30] sm:$0xff] }
  0x22   :  { %v2598_v0 = vpack.c.bf16 %v570_v55, %v563_v54  ;;  %v2600_v8 = vpack.c.bf16 %v696_v61, %v689_v56  ;;  %2565 = vmatprep.subr.bf16.mxu0 %v2972_v63  ;;  %v234_v10 = vand.u32 4294901760, %v2968_v58  ;;  %v237_v28 = vand.u32 4294901760, %v2970_v59 }
  0x23   :  { %2597 = vmatprep.subr.bf16.mxu1 %v2596_v60  ;;  %v2602_v38 = vpack.c.bf16 %v584_v1, %v577_v62  ;;  %v3000_v39 = vsub.f32 %v2961_v52, %v282_v2  ;;  %v3005_v11 = vsub.f32 %v2963_v53, %v285_v3  ;;  %v3011_v12 = vpack.c.bf16 %v279_v22, %v276_v17  ;;  %v3081_v1 = vld [vmem:[#allocation2 + $0xc0] sm:$0xff] }
  0x24   :  { %2599 = vmatpush3.bf16.msra.mxu1 %v2598_v0  ;;  %2567 = vmatpush3.bf16.msra.mxu0 %v2991_v9  ;;  %v3017_v14 = vsub.f32 %v2968_v58, %v234_v10  ;;  %v3022_v15 = vsub.f32 %v2970_v59, %v237_v28  ;;  %v291_v13 = vand.u32 4294901760, %v2978_v5  ;;  %v3034_v43 = vpack.c.bf16 %v231_v27, %v228_v23 }
  0x25   :  { %73 = vperm.xlu1 %2764, %v38_v42   ;;  %70 = vperm.xlu0 %2763, %v37_v47   ;;  %4616 = vst [vmem:[#allocation12_spill] sm:$0xff] %v3000_v39  ;;  %4617 = vst [vmem:[#allocation13_spill] sm:$0xff] %v3005_v11  ;;  %v288_v42 = vand.u32 4294901760, %v2976_v4  ;;  %v4492_v17 = vand.u32 4294901760, %v3000_v39  ;;  %v4486_v22 = vand.u32 4294901760, %v3005_v11  ;;  %v240_v44 = vand.u32 4294901760, %v2995_v29 }
  0x26   :  { %2601 = vmatprep.subr.bf16.mxu1 %v2600_v8  ;;  %4618 = vst [vmem:[#allocation14_spill] sm:$0xff] %v3017_v14  ;;  %4619 = vst [vmem:[#allocation15_spill] sm:$0xff] %v3022_v15  ;;  %v41_v47 = vld [vmem:[%s4479_s0 + $0x60] sm:$0xff]  ;;  %v4485_v48 = vand.u32 4294901760, %v3017_v14  ;;  %v4482_v49 = vand.u32 4294901760, %v3022_v15  ;;  %2569 = vmatprep.subr.bf16.mxu0 %v3011_v12  ;;  %v3054_v19 = vsub.f32 %v2978_v5, %v291_v13  ;;  %v243_v50 = vand.u32 4294901760, %v3026_v16 }
  0x27   :  { %4620 = vst [vmem:[#allocation16_spill] sm:$0xff] %v3034_v43  ;;  %v3049_v18 = vsub.f32 %v2976_v4, %v288_v42  ;;  %v702_v23 = vsub.f32 %v3000_v39, %v4492_v17  ;;  %v709_v27 = vsub.f32 %v3005_v11, %v4486_v22  ;;  %v3066_v51 = vsub.f32 %v2995_v29, %v240_v44  ;;  %v3153_v4 = vld [vmem:[#allocation2 + $0x58] sm:$0xff] }
  0x28   :  { %4622 = vst [vmem:[#allocation18_spill] sm:$0xff] %v3054_v19  ;;  %2603 = vmatpush3.bf16.msra.mxu1 %v2602_v38  ;;  %v590_v54 = vsub.f32 %v3017_v14, %v4485_v48  ;;  %v597_v55 = vsub.f32 %v3022_v15, %v4482_v49  ;;  %v4484_v57 = vand.u32 4294901760, %v3054_v19  ;;  %2571 = vmatpush3.bf16.msra.mxu0 %v3034_v43 }
  0x29   :  { %79 = vperm.xlu1 %2764, %v40_v6   ;;  %76 = vperm.xlu0 %2763, %v39_v7   ;;  %4621 = vst [vmem:[#allocation17_spill] sm:$0xff] %v3049_v18  ;;  %4623 = vst [vmem:[#allocation19_spill] sm:$0xff] %v3066_v51  ;;  %v4483_v56 = vand.u32 4294901760, %v3049_v18  ;;  %v703_v60 = vand.u32 4294901760, %v702_v23  ;;  %v710_v61 = vand.u32 4294901760, %v709_v27  ;;  %v4487_v62 = vand.u32 4294901760, %v3066_v51 }
  0x2a   :  { %v3079_v0 = vsub.f32 %v3026_v16, %v243_v50  ;;  %v44_v6 = vld [vmem:[%s4479_s0 + $0x78] sm:$0xff]  ;;  %v43_v7 = vld [vmem:[%s4479_s0 + $0x70] sm:$0xff]  ;;  %v591_v8 = vand.u32 4294901760, %v590_v54  ;;  %v598_v38 = vand.u32 4294901760, %v597_v55  ;;  %v723_v16 = vsub.f32 %v3054_v19, %v4484_v57  ;;  %v3107_v55 = vld [vmem:[#allocation2 + $0x40] sm:$0xff]  ;;  %s2819_s0 = smov [#allocation5]  }
  0x2b   :  { %v2604_v23 = vpack.c.bf16 %v710_v61, %v703_v60  ;;  %v604_v27 = vsub.f32 %v3066_v51, %v4487_v62  ;;  %v3105_v54 = vpack.c.bf16 %v285_v3, %v282_v2  ;;  %v294_v60 = vand.u32 4294901760, %v3081_v1  ;;  %v3112_v61 = vld [vmem:[#allocation2 + $0xd0] sm:$0xff]  ;;  %v3124_v3 = vld [vmem:[#allocation2 + $0xd8] sm:$0xff]  ;;  %s1944_s28 = sshll.u32 %s2819_s0, 4  ;;  %s1945_s28 = int_to_ptr.vmem [resolvable:$true] %s1944_s28 }
  0x2c   :  { %4624 = vst [vmem:[#allocation20_spill] sm:$0xff] %v3079_v0  ;;  %v4491_v49 = vand.u32 4294901760, %v3079_v0  ;;  %v2606_v57 = vpack.c.bf16 %v598_v38, %v591_v8  ;;  %v724_v22 = vand.u32 4294901760, %v723_v16  ;;  %v3122_v2 = vpack.c.bf16 %v237_v28, %v234_v10  ;;  %s2787_s1 = scalar_lea.vmem %s1945_s28, 2048  ;;  %p2792_p9 = scmp.lt.s32.totalorder %s1945_s28, %s1945_s28 }
  0x2d   :  { %85 = vperm.xlu1 %2764, %v42_v45   ;;  %82 = vperm.xlu0 %2763, %v41_v47   ;;  %v716_v45 = vsub.f32 %v3049_v18, %v4483_v56  ;;  %v3095_v47 = vld [vmem:[#allocation2 + $0xc8] sm:$0xff]  ;;  %4625 = vst [vmem:[#allocation21_spill] sm:$0xff] %v3105_v54  ;;  %v605_v62 = vand.u32 4294901760, %v604_v27  ;;  %v3140_v59 = vpack.c.bf16 %v291_v13, %v288_v42  ;;  %v300_v10 = vand.u32 4294901760, %v3112_v61  ;;  %p2788_p8 = scmp.ne.s32.totalorder %s1945_s28, %s2787_s1  ;;  %p2793_p10 = scmp.lt.s32.totalorder %s2787_s1, %s2787_s1 }
  0x2e   :  { %v3109_v56 = vld [vmem:[#allocation2 + $0x48] sm:$0xff]  ;;  %v611_v52 = vsub.f32 %v3079_v0, %v4491_v49  ;;  %v297_v53 = vand.u32 4294901760, %v3095_v47  ;;  %2605 = vmatprep.subr.bf16.mxu1 %v2604_v23  ;;  %2573 = vmatprep.subr.bf16.mxu0 %v3105_v54 }
  0x2f   :  { %v717_v48 = vand.u32 4294901760, %v716_v45  ;;  %v249_v38 = vand.u32 4294901760, %v3109_v56  ;;  %2607 = vmatpush3.bf16.msra.mxu1 %v2606_v57  ;;  %2575 = vmatpush3.bf16.msra.mxu0 %v3122_v2  ;;  %4626 = vst [vmem:[#allocation22_spill] sm:$0xff] %v3140_v59  ;;  %v303_v57 = vand.u32 4294901760, %v3124_v3  ;;  %v3160_v13 = vsub.f32 %v3112_v61, %v300_v10  ;;  %p2794_p11 = por %p2793_p10, %p2792_p9 }
  0x30   :  { %v612_v45 = vand.u32 4294901760, %v611_v52  ;;  %v3133_v58 = vsub.f32 %v3095_v47, %v297_v53  ;;  %2577 = vmatprep.subr.bf16.mxu0 %v3140_v59 }
  0x31   :  { %91 = vperm.xlu1 %2764, %v44_v6   ;;  %88 = vperm.xlu0 %2763, %v43_v7   ;;  %v2608_v8 = vpack.c.bf16 %v724_v22, %v717_v48  ;;  %v3128_v6 = vsub.f32 %v3081_v1, %v294_v60  ;;  %v246_v7 = vand.u32 4294901760, %v3107_v55  ;;  %v3148_v48 = vsub.f32 %v3109_v56, %v249_v38  ;;  %v3151_v1 = vld [vmem:[#allocation2 + $0x50] sm:$0xff]  ;;  %p2795_p12 = pnand %p2794_p11, %p2788_p8 }
  0x32   :  { %v2610_v5 = vpack.c.bf16 %v612_v45, %v605_v62  ;;  %v4488_v42 = vand.u32 4294901760, %v3133_v58  ;;  %4628 = vst [vmem:[#allocation24_spill] sm:$0xff] %v3160_v13  ;;  %v3164_v56 = vpack.c.bf16 %v243_v50, %v240_v44  ;;  %v3172_v23 = vsub.f32 %v3124_v3, %v303_v57 }
  0x33   :  { %2609 = vmatprep.subr.bf16.mxu1 %v2608_v8  ;;  %v4489_v28 = vand.u32 4294901760, %v3128_v6  ;;  %v3145_v22 = vsub.f32 %v3107_v55, %v246_v7  ;;  %4627 = vst [vmem:[#allocation23_spill] sm:$0xff] %v3148_v48  ;;  %v4493_v62 = vand.u32 4294901760, %v3148_v48  ;;  %v4495_v29 = vand.u32 4294901760, %v3160_v13 }
  0x34   :  { %4629 = vst [vmem:[#allocation25_spill] sm:$0xff] %v3164_v56  ;;  %4630 = vst [vmem:[#allocation26_spill] sm:$0xff] %v3172_v23  ;;  %2611 = vmatpush3.bf16.msra.mxu1 %v2610_v5  ;;  %v737_v27 = vsub.f32 %v3133_v58, %v4488_v42  ;;  %2579 = vmatpush3.bf16.msra.mxu0 %v3164_v56  ;;  %v252_v44 = vand.u32 4294901760, %v3151_v1  ;;  %v255_v50 = vand.u32 4294901760, %v3153_v4  ;;  %v4500_v8 = vand.u32 4294901760, %v3172_v23 }
  0x35   :  { %v730_v16 = vsub.f32 %v3128_v6, %v4489_v28  ;;  %v4490_v47 = vand.u32 4294901760, %v3145_v22  ;;  %v625_v3 = vsub.f32 %v3148_v48, %v4493_v62  ;;  %v744_v5 = vsub.f32 %v3160_v13, %v4495_v29  ;;  %v3197_v28 = vld [vmem:[#allocation2 + $0xe0] sm:$0xff] }
  0x36   :  { %v738_v45 = vand.u32 4294901760, %v737_v27  ;;  %v3192_v42 = vsub.f32 %v3151_v1, %v252_v44  ;;  %v751_v27 = vsub.f32 %v3172_v23, %v4500_v8  ;;  %v3204_v62 = vpack.c.bf16 %v297_v53, %v294_v60  ;;  %v220_v8 = vld [vmem:[#allocation2 + $0xf8] sm:$0xff] }
  0x37   :  { %v731_v55 = vand.u32 4294901760, %v730_v16  ;;  %v618_v52 = vsub.f32 %v3145_v22, %v4490_v47  ;;  %v3195_v16 = vsub.f32 %v3153_v4, %v255_v50  ;;  %v3199_v47 = vld [vmem:[#allocation2 + $0xe8] sm:$0xff]  ;;  %v626_v17 = vand.u32 4294901760, %v625_v3 }
  0x38   :  { %4631 = vst [vmem:[#allocation27_spill] sm:$0xff] %v3204_v62  ;;  %v745_v1 = vand.u32 4294901760, %v744_v5  ;;  %v4501_v41 = vand.u32 4294901760, %v3192_v42  ;;  %v752_v35 = vand.u32 4294901760, %v751_v27  ;;  %2581 = vmatprep.subr.bf16.mxu0 %v3204_v62  ;;  %v309_v3 = vand.u32 4294901760, %v3199_v47 }
  0x39   :  { %v619_v49 = vand.u32 4294901760, %v618_v52  ;;  %v2612_v29 = vpack.c.bf16 %v738_v45, %v731_v55  ;;  %v4503_v4 = vand.u32 4294901760, %v3195_v16  ;;  %v306_v52 = vand.u32 4294901760, %v3197_v28 }
  0x3a   :  { %v632_v60 = vsub.f32 %v3192_v42, %v4501_v41  ;;  %v3219_v55 = vpack.c.bf16 %v249_v38, %v246_v7  ;;  %v2616_v45 = vpack.c.bf16 %v752_v35, %v745_v1  ;;  %v261_v27 = vand.u32 4294901760, %v202_v40  ;;  %v203_v1 = vld [vmem:[#allocation2 + $0x70] sm:$0xff] }
  0x3b   :  { %v2614_v36 = vpack.c.bf16 %v626_v17, %v619_v49  ;;  %2613 = vmatprep.subr.bf16.mxu1 %v2612_v29  ;;  %v639_v53 = vsub.f32 %v3195_v16, %v4503_v4  ;;  %v258_v17 = vand.u32 4294901760, %v3206_v46  ;;  %v219_v49 = vld [vmem:[#allocation2 + $0xf0] sm:$0xff]  ;;  %v3223_v5 = vsub.f32 %v3197_v28, %v306_v52 }
  0x3c   :  { %4632 = vst [vmem:[#allocation28_spill] sm:$0xff] %v3219_v55  ;;  %v3226_v29 = vsub.f32 %v3199_v47, %v309_v3  ;;  %v633_v41 = vand.u32 4294901760, %v632_v60  ;;  %2583 = vmatpush3.bf16.msra.mxu0 %v3219_v55  ;;  %v3234_v38 = vpack.c.bf16 %v303_v57, %v300_v10  ;;  %v3238_v28 = vsub.f32 %v202_v40, %v261_v27  ;;  %v204_v60 = vld [vmem:[#allocation2 + $0x78] sm:$0xff] }
  0x3d   :  { %2615 = vmatpush3.bf16.msra.mxu1 %v2614_v36  ;;  %v640_v34 = vand.u32 4294901760, %v639_v53  ;;  %v3230_v7 = vsub.f32 %v3206_v46, %v258_v17  ;;  %v4505_v35 = vand.u32 4294901760, %v3223_v5  ;;  %v312_v47 = vand.u32 4294901760, %v219_v49 }
  0x3e   :  { %4633 = vst [vmem:[#allocation29_spill] sm:$0xff] %v3234_v38  ;;  %2617 = vmatprep.subr.bf16.mxu1 %v2616_v45  ;;  %v4506_v36 = vand.u32 4294901760, %v3226_v29  ;;  %2585 = vmatprep.subr.bf16.mxu0 %v3234_v38  ;;  %v315_v46 = vand.u32 4294901760, %v220_v8  ;;  %v3242_v31 = vpack.c.bf16 %v255_v50, %v252_v44  ;;  %v4513_v10 = vand.u32 4294901760, %v3238_v28 }
  0x3f   :  { %v2618_v53 = vpack.c.bf16 %v640_v34, %v633_v41  ;;  %v4510_v4 = vand.u32 4294901760, %v3230_v7  ;;  %v758_v61 = vsub.f32 %v3223_v5, %v4505_v35  ;;  %v3251_v57 = vsub.f32 %v219_v49, %v312_v47 }
  0x40   :  { %4634 = vst [vmem:[#allocation30_spill] sm:$0xff] %v3242_v31  ;;  %v765_v40 = vsub.f32 %v3226_v29, %v4506_v36  ;;  %v3256_v41 = vsub.f32 %v220_v8, %v315_v46  ;;  %2587 = vmatpush3.bf16.msra.mxu0 %v3242_v31  ;;  %v264_v44 = vand.u32 4294901760, %v203_v1  ;;  %v267_v50 = vand.u32 4294901760, %v204_v60 }
  0x41   :  { %4635 = vst [vmem:[#allocation31_spill] sm:$0xff] %v3251_v57  ;;  %2619 = vmatpush3.bf16.msra.mxu1 %v2618_v53  ;;  %v646_v34 = vsub.f32 %v3230_v7, %v4510_v4  ;;  %v759_v45 = vand.u32 4294901760, %v758_v61  ;;  %v653_v36 = vsub.f32 %v3238_v28, %v4513_v10  ;;  %v4519_v49 = vand.u32 4294901760, %v3251_v57 }
  0x42   :  { %4636 = vst [vmem:[#allocation32_spill] sm:$0xff] %v3256_v41  ;;  %v766_v35 = vand.u32 4294901760, %v765_v40  ;;  %v4516_v53 = vand.u32 4294901760, %v3256_v41  ;;  %v3264_v38 = vsub.f32 %v203_v1, %v264_v44  ;;  %v3266_v4 = vsub.f32 %v204_v60, %v267_v50 }
  0x43   :  { %v647_v30 = vand.u32 4294901760, %v646_v34  ;;  %v654_v55 = vand.u32 4294901760, %v653_v36  ;;  %v772_v61 = vsub.f32 %v3251_v57, %v4519_v49  ;;  %v3271_v40 = vpack.c.bf16 %v309_v3, %v306_v52 }
  0x44   :  { %v2620_v8 = vpack.c.bf16 %v766_v35, %v759_v45  ;;  %v779_v10 = vsub.f32 %v3256_v41, %v4516_v53  ;;  %v4518_v34 = vand.u32 4294901760, %v3264_v38  ;;  %v4517_v31 = vand.u32 4294901760, %v3266_v4 }
  0x45   :  { %v3278_v1 = vpack.c.bf16 %v261_v27, %v258_v17  ;;  %v2622_v60 = vpack.c.bf16 %v654_v55, %v647_v30  ;;  %v773_v35 = vand.u32 4294901760, %v772_v61  ;;  %2589 = vmatprep.subr.bf16.mxu0 %v3271_v40  ;;  %v3281_v36 = vpack.c.bf16 %v315_v46, %v312_v47 }
  0x46   :  { %2621 = vmatprep.subr.bf16.mxu1 %v2620_v8  ;;  %v3283_v45 = vpack.c.bf16 %v267_v50, %v264_v44  ;;  %v780_v52 = vand.u32 4294901760, %v779_v10  ;;  %v660_v3 = vsub.f32 %v3264_v38, %v4518_v34  ;;  %v667_v53 = vsub.f32 %v3266_v4, %v4517_v31 }
  0x47   :  { %4637 = vst [vmem:[#allocation33_spill] sm:$0xff] %v3278_v1  ;;  %4638 = vst [vmem:[#allocation34_spill] sm:$0xff] %v3281_v36  ;;  %2591 = vmatpush3.bf16.msra.mxu0 %v3278_v1  ;;  %v2628_v30 = vpack.c.bf16 %v2885_v21, %v2883_v20  ;;  %2623 = vmatpush3.bf16.msra.mxu1 %v2622_v60  ;;  %v26_v34 = vlaneseq }
  0x48   :  { %4639 = vst [vmem:[#allocation35_spill] sm:$0xff] %v3283_v45  ;;  %2593 = vmatprep.subr.bf16.mxu0 %v3281_v36  ;;  %v2624_v47 = vpack.c.bf16 %v780_v52, %v773_v35  ;;  %v661_v46 = vand.u32 4294901760, %v660_v3  ;;  %v668_v10 = vand.u32 4294901760, %v667_v53 }
  0x4a   :  { %2625 = vmatprep.subr.bf16.mxu1 %v2624_v47  ;;  %v2626_v31 = vpack.c.bf16 %v668_v10, %v661_v46  ;;  %v4520_v46 = vmov 0.0   ;;  %v4531_v10 = vmov 1.0  }
  0x4b   :  { %2595 = vmatpush3.bf16.msra.mxu0 %v3283_v45 }
  0x4c   :  { %2629 = vmatprep.subr.bf16.mxu0 %v2628_v30  ;;  %2627 = vmatpush3.bf16.msra.mxu1 %v2626_v31  ;;  %v3327_v30 = vand.u32 127, %v26_v34 }
  0x4d   :  { %2661 = vmatprep.subr.bf16.mxu1 %v2972_v63 }
  0x4e   :  { %v3330_v31 = vadd.s32 128, %v3327_v30 }
  0x94   :  { %v3332_v49 = vpop.permute.xlu1 %52  ;;  %v3334_v52 = vpop.permute.xlu0 %46 }
  0x95   :  { %4640 = vst [vmem:[#allocation36_spill] sm:$0xff] %v3332_v49  ;;  %4641 = vst [vmem:[#allocation37_spill] sm:$0xff] %v3334_v52  ;;  %vm93_vm0 = vcmp.eq.s32.totalorder %v3327_v30, %v3334_v52  ;;  %vm94_vm1 = vcmp.eq.s32.totalorder %v3330_v31, %v3334_v52  ;;  %vm97_vm2 = vcmp.eq.s32.totalorder %v3327_v30, %v3332_v49 }
  0x96   :  { %v1956_v34 = vsel %vm93_vm0, 1.0, %v4520_v46  ;;  %1988 = vmatprep.mubr.msk.f32.mxu1 %vm94_vm1, %v4531_v10  ;;  %v1957_v47 = vsel %vm94_vm1, 1.0, %v4520_v46  ;;  %vm98_vm3 = vcmp.eq.s32.totalorder %v3330_v31, %v3332_v49  ;;  %v1960_v61 = vsel %vm97_vm2, 1.0, %v4520_v46 }
  0x97   :  { %1989 = vmatmul.mubr.msk.f32.vlgmr.msra.gmra.mrb[0].mxu1 %vm93_vm0, %v4531_v10  ;;  %v3360_v3 = vsub.f32 %v1956_v34, %v1956_v34  ;;  %v3364_v53 = vsub.f32 %v1957_v47, %v1957_v47  ;;  %v1961_v8 = vsel %vm98_vm3, 1.0, %v4520_v46  ;;  %v4650_v49 = vmov 1.0  }
  0x98   :  { %v3362_v35 = vpop.permute.xlu0 %49  ;;  %2663 = vmatpush3.bf16.msra.mxu1 %v2991_v9  ;;  %v3372_v60 = vpop.permute.xlu1 %55  ;;  %v3412_v55 = vsub.f32 %v1961_v8, %v1961_v8 }
  0x99   :  { %4642 = vst [vmem:[#allocation38_spill] sm:$0xff] %v3362_v35  ;;  %vm95_vm4 = vcmp.eq.s32.totalorder %v3327_v30, %v3362_v35  ;;  %vm96_vm5 = vcmp.eq.s32.totalorder %v3330_v31, %v3362_v35  ;;  %2665 = vmatprep.subr.bf16.mxu1 %v3011_v12  ;;  %4643 = vst [vmem:[#allocation39_spill] sm:$0xff] %v3372_v60  ;;  %vm100_vm6 = vcmp.eq.s32.totalorder %v3330_v31, %v3372_v60 }
  0x9a   :  { %v1958_v34 = vsel %vm95_vm4, 1.0, %v4520_v46  ;;  %v1959_v47 = vsel %vm96_vm5, 1.0, %v4520_v46  ;;  %1990 = vmatprep.mubr.msk.f32.mxu1 %vm96_vm5, %v4531_v10  ;;  %v3414_v46 = vsub.f32 %v1960_v61, %v1960_v61  ;;  %v4646_v17 = vand.u32 4294901760, %v3364_v53 }
  0x9b   :  { %1991 = vmatmul.mubr.msk.f32.gmra.mrb[2].mxu1 %vm95_vm4, %v4531_v10  ;;  %v3400_v50 = vsub.f32 %v1959_v47, %v1959_v47  ;;  %v3402_v44 = vsub.f32 %v1958_v34, %v1958_v34  ;;  %v4644_v47 = vmov 0.0   ;;  %v4647_v8 = vand.u32 4294901760, %v3360_v3 }
  0x9c   :  { %1992 = vmatprep.mubr.msk.f32.mxu1 %vm98_vm3, %v4531_v10  ;;  %2667 = vmatpush3.bf16.msra.mxu1 %v3034_v43  ;;  %v1963_v34 = vsel %vm100_vm6, 1.0, %v4644_v47  ;;  %v3424_v27 = vpop.permute.xlu0 %58  ;;  %v320_v35 = vsub.f32 %v3364_v53, %v4646_v17  ;;  %vm99_vm7 = vcmp.eq.s32.totalorder %v3327_v30, %v3372_v60  ;;  %v3442_v17 = vpop.permute.xlu1 %61 }
  0x9d   :  { %2669 = vmatprep.subr.bf16.mxu1 %v3105_v54  ;;  %4645 = vst [vmem:[#allocation40_spill] sm:$0xff] %v3424_v27  ;;  %v326_v61 = vsub.f32 %v3360_v3, %v4647_v8  ;;  %v4533_v52 = vand.u32 4294901760, %v3400_v50  ;;  %4648 = vst [vmem:[#allocation41_spill] sm:$0xff] %v3442_v17  ;;  %v3444_v43 = vsub.f32 %v1963_v34, %v1963_v34 }
  0x9e   :  { %v321_v54 = vand.u32 4294901760, %v320_v35  ;;  %vm102_vm8 = vcmp.eq.s32.totalorder %v3330_v31, %v3424_v27  ;;  %v4649_v35 = vand.u32 4294901760, %v3402_v44  ;;  %vm101_vm9 = vcmp.eq.s32.totalorder %v3327_v30, %v3424_v27 }
  0x9f   :  { %1993 = vmatmul.mubr.msk.f32.gmra.mrb[4].mxu1 %vm97_vm2, %v4531_v10  ;;  %v327_v8 = vand.u32 4294901760, %v326_v61  ;;  %vm104_vm10 = vcmp.eq.s32.totalorder %v3330_v31, %v3442_v17  ;;  %vm4554_vm11 = vcmp.eq.s32.totalorder %v3327_v30, %v3442_v17 }
  0xa0   :  { %1994 = vmatprep.mubr.msk.f32.mxu1 %vm100_vm6, %v4531_v10  ;;  %2671 = vmatpush3.bf16.msra.mxu1 %v3122_v2  ;;  %v341_v34 = vsub.f32 %v3402_v44, %v4649_v35  ;;  %v3473_v35 = vpop.permute.xlu0 %64 }
  0xa1   :  { %2673 = vmatprep.subr.bf16.mxu1 %v3140_v59  ;;  %322 = vmatprep.mubr.f32.mxu0 %v321_v54  ;;  %v335_v59 = vsub.f32 %v3400_v50, %v4533_v52  ;;  %v4651_v54 = vpack.c.bf16 %v2897_v25, %v2892_v24  ;;  %4652 = vst [vmem:[#allocation42_spill] sm:$0xff] %v3473_v35 }
  0xa2   :  { %328 = vmatmul.mubr.f32.vlgmr.msra.gmra.mrb[0].mxu0 %v327_v8  ;;  %v342_v61 = vand.u32 4294901760, %v341_v34  ;;  %v4653_v8 = vpack.c.bf16 %v2916_v32, %v2902_v26  ;;  %vm4548_vm13 = vcmp.eq.s32.totalorder %v3330_v31, %v3473_v35  ;;  %vm4553_vm14 = vcmp.eq.s32.totalorder %v3327_v30, %v3473_v35 }
  0xa3   :  { %1995 = vmatmul.mubr.msk.f32.gmra.mrb[6].mxu1 %vm99_vm7, %v4531_v10  ;;  %v1962_v10 = vsel %vm99_vm7, 1.0, %v4644_v47  ;;  %2631 = vmatpush3.bf16.msra.mxu0 %v4651_v54  ;;  %v336_v52 = vand.u32 4294901760, %v335_v59  ;;  %v3487_v54 = vpop.permute.xlu1 %67  ;;  %v4655_v59 = vand.u32 4294901760, %v3412_v55  ;;  %v1968_v32 = vsel %vm4553_vm14, 1.0, %v4644_v47 }
  0xa4   :  { %1996 = vmatprep.mubr.msk.f32.mxu1 %vm102_vm8, %v4650_v49  ;;  %2675 = vmatpush3.bf16.msra.mxu1 %v3164_v56  ;;  %v3485_v60 = vsub.f32 %v1962_v10, %v1962_v10  ;;  %4654 = vst [vmem:[#allocation43_spill] sm:$0xff] %v3487_v54  ;;  %v4656_v56 = vand.u32 4294901760, %v3414_v46  ;;  %vm4555_vm12 = vcmp.eq.s32.totalorder %v3330_v31, %v3487_v54  ;;  %v3533_v27 = vpop.permute.xlu0 %70 }
  0xa5   :  { %2633 = vmatprep.subr.bf16.mxu0 %v4653_v8  ;;  %337 = vmatprep.mubr.f32.mxu0 %v336_v52  ;;  %v350_v34 = vsub.f32 %v3412_v55, %v4655_v59  ;;  %v1965_v52 = vsel %vm102_vm8, 1.0, %v4644_v47  ;;  %v4657_v59 = vpack.c.bf16 %v2929_v37, %v2921_v33  ;;  %4659 = vst [vmem:[#allocation44_spill] sm:$0xff] %v3533_v27  ;;  %v4660_v37 = vand.u32 4294901760, %v3444_v43 }
  0xa6   :  { %v356_v25 = vsub.f32 %v3414_v46, %v4656_v56  ;;  %343 = vmatmul.mubr.f32.gmra.mrb[2].mxu0 %v342_v61  ;;  %v1964_v56 = vsel %vm101_vm9, 1.0, %v4644_v47  ;;  %2677 = vmatprep.subr.bf16.mxu1 %v3204_v62  ;;  %v1967_v61 = vsel %vm104_vm10, 1.0, %v4644_v47  ;;  %vm4571_vm15 = vcmp.eq.s32.totalorder %v3327_v30, %v3487_v54 }
  0xa7   :  { %1997 = vmatmul.mubr.msk.f32.gmra.mrb[8].mxu1 %vm101_vm9, %v4650_v49  ;;  %v351_v10 = vand.u32 4294901760, %v350_v34  ;;  %2635 = vmatpush3.bf16.msra.mxu0 %v4657_v59  ;;  %v4658_v34 = vpack.c.bf16 %v3005_v11, %v3000_v39  ;;  %v3529_v59 = vsub.f32 %v1965_v52, %v1965_v52  ;;  %v1966_v52 = vsel %vm4554_vm11, 1.0, %v4644_v47  ;;  %v3559_v33 = vpop.permute.xlu1 %73  ;;  %v4664_v39 = vld [vmem:[#allocation28_spill] sm:$0xff] }
  0xa8   :  { %1998 = vmatprep.mubr.msk.f32.mxu1 %vm104_vm10, %v4650_v49  ;;  %v357_v8 = vand.u32 4294901760, %v356_v25  ;;  %v365_v25 = vsub.f32 %v3444_v43, %v4660_v37  ;;  %v1971_v37 = vsel %vm4555_vm12, 1.0, %v4644_v47  ;;  %4661 = vst [vmem:[#allocation45_spill] sm:$0xff] %v3559_v33  ;;  %2679 = vmatpush3.bf16.msra.mxu1 %v4664_v39  ;;  %v3568_v62 = vsub.f32 %v1967_v61, %v1967_v61 }
  0xa9   :  { %2637 = vmatprep.subr.bf16.mxu0 %v4658_v34  ;;  %352 = vmatprep.mubr.f32.mxu0 %v351_v10  ;;  %v3547_v34 = vsub.f32 %v1964_v56, %v1964_v56  ;;  %v1969_v10 = vsel %vm4548_vm13, 1.0, %v4644_v47  ;;  %v4662_v56 = vand.u32 4294901760, %v3485_v60  ;;  %v1970_v61 = vsel %vm4571_vm15, 1.0, %v4644_v47 }
  0xaa   :  { %358 = vmatmul.mubr.f32.gmra.mrb[4].mxu0 %v357_v8  ;;  %v366_v17 = vand.u32 4294901760, %v365_v25  ;;  %v4663_v8 = vpack.c.bf16 %v3022_v15, %v3017_v14  ;;  %v4665_v25 = vpack.c.bf16 %v3054_v19, %v3049_v18  ;;  %v4556_v15 = vand.u32 4294901760, %v3529_v59  ;;  %v3643_v18 = vpop.permute.xlu0 %76 }
  0xab   :  { %1999 = vmatmul.mubr.msk.f32.gmra.mrb[10].mxu1 %vm4554_vm11, %v4650_v49  ;;  %v371_v11 = vsub.f32 %v3485_v60, %v4662_v56  ;;  %v3583_v56 = vsub.f32 %v1966_v52, %v1966_v52  ;;  %v3594_v35 = vsub.f32 %v1971_v37, %v1971_v37  ;;  %v3596_v19 = vsub.f32 %v1969_v10, %v1969_v10  ;;  %v4667_v10 = vld [vmem:[#allocation30_spill] sm:$0xff] }
  0xac   :  { %2000 = vmatprep.mubr.msk.f32.mxu1 %vm4548_vm13, %v4650_v49  ;;  %2639 = vmatpush3.bf16.msra.mxu0 %v4663_v8  ;;  %vm4563_vm13 = vcmp.eq.s32.totalorder %v3330_v31, %v3533_v27  ;;  %vm4564_vm11 = vcmp.eq.s32.totalorder %v3327_v30, %v3533_v27  ;;  %v380_v37 = vsub.f32 %v3529_v59, %v4556_v15 }
  0xad   :  { %2641 = vmatprep.subr.bf16.mxu0 %v4665_v25  ;;  %367 = vmatprep.mubr.f32.mxu0 %v366_v17  ;;  %v372_v8 = vand.u32 4294901760, %v371_v11  ;;  %v4666_v25 = vld [vmem:[#allocation29_spill] sm:$0xff]  ;;  %v3602_v17 = vsub.f32 %v1968_v32, %v1968_v32  ;;  %v1973_v11 = vsel %vm4563_vm13, 1.0, %v4644_v47  ;;  %v3614_v52 = vsub.f32 %v1970_v61, %v1970_v61  ;;  %4670 = vst [vmem:[#allocation46_spill] sm:$0xff] %v3643_v18 }
  0xae   :  { %2681 = vmatprep.subr.bf16.mxu1 %v4666_v25  ;;  %v4668_v32 = vand.u32 4294901760, %v3547_v34  ;;  %v381_v15 = vand.u32 4294901760, %v380_v37  ;;  %v1972_v54 = vsel %vm4564_vm11, 1.0, %v4644_v47  ;;  %v4671_v14 = vpack.c.bf16 %v3133_v58, %v3128_v6 }
  0xaf   :  { %2001 = vmatmul.mubr.msk.f32.gmra.mrb[12].mxu1 %vm4553_vm14, %v4650_v49  ;;  %vm4568_vm14 = vcmp.eq.s32.totalorder %v3330_v31, %v3559_v33  ;;  %373 = vmatmul.mubr.f32.gmra.mrb[6].mxu0 %v372_v8  ;;  %v4578_v27 = vand.u32 4294901760, %v3614_v52 }
  0xb0   :  { %2002 = vmatprep.mubr.msk.f32.mxu1 %vm4555_vm12, %v4650_v49  ;;  %2683 = vmatpush3.bf16.msra.mxu1 %v4667_v10  ;;  %v386_v25 = vsub.f32 %v3547_v34, %v4668_v32  ;;  %vm4581_vm12 = vcmp.eq.s32.totalorder %v3327_v30, %v3559_v33  ;;  %v1975_v8 = vsel %vm4568_vm14, 1.0, %v4644_v47  ;;  %v4669_v32 = vpack.c.bf16 %v3079_v0, %v3066_v51  ;;  %v3650_v0 = vpop.permute.xlu1 %79 }
  0xb1   :  { %v3641_v10 = vsub.f32 %v1973_v11, %v1973_v11  ;;  %2685 = vmatprep.subr.bf16.mxu1 %v3271_v40  ;;  %4672 = vst [vmem:[#allocation47_spill] sm:$0xff] %v3650_v0  ;;  %382 = vmatprep.mubr.f32.mxu0 %v381_v15  ;;  %v4567_v11 = vand.u32 4294901760, %v3596_v19  ;;  %v3663_v61 = vsub.f32 %v1975_v8, %v1975_v8  ;;  %v4674_v15 = vand.u32 4294901760, %v3583_v56 }
  0xb2   :  { %2643 = vmatpush3.bf16.msra.mxu0 %v4669_v32  ;;  %v387_v37 = vand.u32 4294901760, %v386_v25  ;;  %v4673_v32 = vand.u32 4294901760, %v3568_v62  ;;  %v3672_v25 = vsub.f32 %v1972_v54, %v1972_v54 }
  0xb3   :  { %2003 = vmatmul.mubr.msk.f32.gmra.mrb[14].mxu1 %vm4571_vm15, %v4650_v49  ;;  %2645 = vmatprep.subr.bf16.mxu0 %v4671_v14  ;;  %v1974_v14 = vsel %vm4581_vm12, 1.0, %v4644_v47  ;;  %v410_v8 = vsub.f32 %v3596_v19, %v4567_v11  ;;  %v4677_v11 = vpack.c.bf16 %v3172_v23, %v3160_v13  ;;  %vm4594_vm15 = vcmp.eq.s32.totalorder %v3327_v30, %v3650_v0 }
  0xb4   :  { %2004 = vmatprep.mubr.msk.f32.mxu1 %vm4563_vm13, %v4650_v49  ;;  %v395_v51 = vsub.f32 %v3568_v62, %v4673_v32  ;;  %2687 = vmatpush3.bf16.msra.mxu1 %v3278_v1  ;;  %v401_v32 = vsub.f32 %v3583_v56, %v4674_v15  ;;  %vm4579_vm13 = vcmp.eq.s32.totalorder %v3330_v31, %v3643_v18  ;;  %v4676_v15 = vand.u32 4294901760, %v3602_v17 }
  0xb5   :  { %388 = vmatmul.mubr.f32.gmra.mrb[8].mxu0 %v387_v37  ;;  %v4675_v37 = vpack.c.bf16 %v3148_v48, %v3145_v22  ;;  %2689 = vmatprep.subr.bf16.mxu1 %v3281_v36  ;;  %v4678_v1 = vand.u32 4294901760, %v3594_v35  ;;  %v4583_v48 = vand.u32 4294901760, %v3672_v25  ;;  %v4682_v23 = vand.u32 4294901760, %v3641_v10 }
  0xb6   :  { %v396_v39 = vand.u32 4294901760, %v395_v51  ;;  %v402_v54 = vand.u32 4294901760, %v401_v32  ;;  %v416_v51 = vsub.f32 %v3602_v17, %v4676_v15  ;;  %v431_v15 = vsub.f32 %v3614_v52, %v4578_v27 }
  0xb7   :  { %2005 = vmatmul.mubr.msk.f32.gmra.mrb[16].mxu1 %vm4564_vm11, %v4650_v49  ;;  %2647 = vmatpush3.bf16.msra.mxu0 %v4675_v37  ;;  %vm4582_vm11 = vcmp.eq.s32.totalorder %v3330_v31, %v3650_v0  ;;  %v411_v37 = vand.u32 4294901760, %v410_v8  ;;  %v425_v32 = vsub.f32 %v3594_v35, %v4678_v1  ;;  %v3727_v8 = vpop.permute.xlu0 %82  ;;  %v4683_v27 = vpack.c.bf16 %v3226_v29, %v3223_v5 }
  0xb8   :  { %2006 = vmatprep.mubr.msk.f32.mxu1 %vm4568_vm14, %v4650_v49  ;;  %2649 = vmatprep.subr.bf16.mxu0 %v4677_v11  ;;  %vm4580_vm14 = vcmp.eq.s32.totalorder %v3327_v30, %v3643_v18  ;;  %v1977_v11 = vsel %vm4579_vm13, 1.0, %v4644_v47  ;;  %v1979_v1 = vsel %vm4582_vm11, 1.0, %v4644_v47  ;;  %4679 = vst [vmem:[#allocation48_spill] sm:$0xff] %v3727_v8 }
  0xb9   :  { %397 = vmatprep.mubr.f32.mxu0 %v396_v39  ;;  %2691 = vmatpush3.bf16.msra.mxu1 %v3283_v45  ;;  %v3711_v39 = vsub.f32 %v1974_v14, %v1974_v14  ;;  %v1976_v14 = vsel %vm4580_vm14, 1.0, %v4644_v47  ;;  %v3737_v33 = vsub.f32 %v1977_v11, %v1977_v11  ;;  %v3739_v45 = vpop.permute.xlu1 %85  ;;  %v426_v36 = vand.u32 4294901760, %v425_v32 }
  0xba   :  { %403 = vmatmul.mubr.f32.gmra.mrb[10].mxu0 %v402_v54  ;;  %v417_v54 = vand.u32 4294901760, %v416_v51  ;;  %2725 = vmatprep.subr.bf16.mxu1 %v2972_v63  ;;  %4681 = vst [vmem:[#allocation49_spill] sm:$0xff] %v3739_v45  ;;  %v440_v51 = vsub.f32 %v3641_v10, %v4682_v23  ;;  %v4684_v63 = vand.u32 4294901760, %v2883_v20  ;;  %v4685_v32 = vand.u32 4294901760, %v2885_v21 }
  0xbb   :  { %2007 = vmatmul.mubr.msk.f32.gmra.mrb[18].mxu1 %vm4581_vm12, %v4650_v49  ;;  %412 = vmatprep.mubr.f32.mxu0 %v411_v37  ;;  %v4680_v37 = vpack.c.bf16 %v3195_v16, %v3192_v42  ;;  %v1978_v23 = vsel %vm4594_vm15, 1.0, %v4644_v47  ;;  %v3762_v13 = vsub.f32 %v1976_v14, %v1976_v14  ;;  %v432_v20 = vand.u32 4294901760, %v431_v15 }
  0xbc   :  { %2008 = vmatprep.mubr.msk.f32.mxu1 %vm4579_vm13, %v4650_v49  ;;  %v2692_v11 = vpack.c.bf16 %v4685_v32, %v4684_v63  ;;  %vm4590_vm13 = vcmp.eq.s32.totalorder %v3330_v31, %v3727_v8  ;;  %v446_v21 = vsub.f32 %v3672_v25, %v4583_v48  ;;  %vm4591_vm12 = vcmp.eq.s32.totalorder %v3327_v30, %v3727_v8 }
  0xbd   :  { %2651 = vmatpush3.bf16.msra.mxu0 %v4680_v37  ;;  %v3760_v37 = vsub.f32 %v1979_v1, %v1979_v1  ;;  %v4686_v1 = vpack.c.bf16 %v3238_v28, %v3230_v7  ;;  %v4687_v14 = vand.u32 4294901760, %v3663_v61  ;;  %v4688_v63 = vpack.c.bf16 %v3256_v41, %v3251_v57 }
  0xbe   :  { %2653 = vmatprep.subr.bf16.mxu0 %v4683_v27  ;;  %418 = vmatmul.mubr.f32.gmra.mrb[12].mxu0 %v417_v54  ;;  %v4596_v27 = vand.u32 4294901760, %v3711_v39  ;;  %v1981_v32 = vsel %vm4590_vm13, 1.0, %v4644_v47  ;;  %v4592_v48 = vand.u32 4294901760, %v3762_v13  ;;  %v4692_v18 = vand.u32 4294901760, %v3737_v33 }
  0xbf   :  { %2009 = vmatmul.mubr.msk.f32.gmra.mrb[20].mxu1 %vm4580_vm14, %v4650_v49  ;;  %427 = vmatprep.mubr.f32.mxu0 %v426_v36  ;;  %vm4593_vm14 = vcmp.eq.s32.totalorder %v3330_v31, %v3739_v45  ;;  %v441_v36 = vand.u32 4294901760, %v440_v51  ;;  %v455_v54 = vsub.f32 %v3663_v61, %v4687_v14  ;;  %v3796_v51 = vsub.f32 %v1978_v23, %v1978_v23 }
  0xc0   :  { %2010 = vmatprep.mubr.msk.f32.mxu1 %vm4582_vm11, %v4650_v49  ;;  %vm119_vm11 = vcmp.eq.s32.totalorder %v3327_v30, %v3739_v45  ;;  %v1980_v23 = vsel %vm4591_vm12, 1.0, %v4644_v47  ;;  %v447_v14 = vand.u32 4294901760, %v446_v21  ;;  %v3821_v15 = vsub.f32 %v1981_v32, %v1981_v32 }
  0xc1   :  { %2655 = vmatpush3.bf16.msra.mxu0 %v4686_v1  ;;  %v1983_v1 = vsel %vm4593_vm14, 1.0, %v4644_v47  ;;  %v456_v0 = vand.u32 4294901760, %v455_v54  ;;  %v470_v41 = vsub.f32 %v3737_v33, %v4692_v18  ;;  %v4595_v57 = vand.u32 4294901760, %v3760_v37 }
  0xc2   :  { %2657 = vmatprep.subr.bf16.mxu0 %v4688_v63  ;;  %433 = vmatmul.mubr.f32.gmra.mrb[14].mxu0 %v432_v20  ;;  %v3812_v20 = vpop.permute.xlu0 %88  ;;  %v461_v63 = vsub.f32 %v3711_v39, %v4596_v27  ;;  %4691 = vst [vmem:[#allocation51_spill] sm:$0xff] %v3821_v15  ;;  %v1982_v21 = vsel %vm119_vm11, 1.0, %v4644_v47  ;;  %v3835_v32 = vsub.f32 %v1983_v1, %v1983_v1  ;;  %v4602_v1 = vand.u32 4294901760, %v3796_v51 }
  0xc3   :  { %2011 = vmatmul.mubr.msk.f32.gmra.mrb[22].mxu1 %vm4594_vm15, %v4650_v49  ;;  %442 = vmatprep.mubr.f32.mxu0 %v441_v36  ;;  %4689 = vst [vmem:[#allocation50_spill] sm:$0xff] %v3812_v20  ;;  %v4690_v36 = vpack.c.bf16 %v3266_v4, %v3264_v38  ;;  %v3843_v18 = vsub.f32 %v1980_v23, %v1980_v23  ;;  %v4601_v23 = vand.u32 4294901760, %v3821_v15 }
  0xc4   :  { %2012 = vmatprep.mubr.msk.f32.mxu1 %vm4590_vm13, %v4650_v49  ;;  %vm122_vm13 = vcmp.eq.s32.totalorder %v3330_v31, %v3812_v20  ;;  %v462_v54 = vand.u32 4294901760, %v461_v63 }
  0xc5   :  { %2659 = vmatpush3.bf16.msra.mxu0 %v4690_v36  ;;  %v485_v36 = vsub.f32 %v3760_v37, %v4595_v57  ;;  %v1985_v63 = vsel %vm122_vm13, 1.0, %v4644_v47  ;;  %v4607_v57 = vand.u32 4294901760, %v3843_v18  ;;  %v500_v45 = vsub.f32 %v3821_v15, %v4601_v23 }
  0xc6   :  { %2693 = vmatprep.subr.bf16.mxu0 %v2692_v11  ;;  %448 = vmatmul.mubr.f32.gmra.mrb[16].mxu0 %v447_v14  ;;  %v3845_v11 = vpop.permute.xlu1 %91  ;;  %v476_v14 = vsub.f32 %v3762_v13, %v4592_v48  ;;  %v3865_v48 = vsub.f32 %v1982_v21, %v1982_v21  ;;  %v491_v21 = vsub.f32 %v3796_v51, %v4602_v1 }
  0xc7   :  { %2013 = vmatmul.mubr.msk.f32.gmra.mrb[24].mxu1 %vm4591_vm12, %v4650_v49  ;;  %457 = vmatprep.mubr.f32.mxu0 %v456_v0  ;;  %4693 = vst [vmem:[#allocation52_spill] sm:$0xff] %v3845_v11  ;;  %vm121_vm12 = vcmp.eq.s32.totalorder %v3327_v30, %v3812_v20  ;;  %v471_v0 = vand.u32 4294901760, %v470_v41  ;;  %vm124_vm15 = vcmp.eq.s32.totalorder %v3330_v31, %v3845_v11  ;;  %v501_v20 = vand.u32 4294901760, %v500_v45 }
  0xc8   :  { %2014 = vmatprep.mubr.msk.f32.mxu1 %vm4593_vm14, %v4650_v49  ;;  %vm123_vm14 = vcmp.eq.s32.totalorder %v3327_v30, %v3845_v11  ;;  %v1984_v41 = vsel %vm121_vm12, 1.0, %v4644_v47  ;;  %v3883_v27 = vsub.f32 %v1985_v63, %v1985_v63  ;;  %v492_v23 = vand.u32 4294901760, %v491_v21 }
  0xc9   :  { %v3905_v63 = vsub.f32 %v1984_v41, %v1984_v41  ;;  %v520_v1 = vand.u32 4294901760, %v3865_v48  ;;  %v4695_v41 = vand.u32 4294901760, %v3364_v53 }
  0xca   :  { %463 = vmatmul.mubr.f32.gmra.mrb[18].mxu0 %v462_v54  ;;  %v477_v54 = vand.u32 4294901760, %v476_v14  ;;  %v1987_v14 = vsel %vm124_vm15, 1.0, %v4644_v47  ;;  %v4610_v15 = vand.u32 4294901760, %v3883_v27 }
  0xcb   :  { %2015 = vmatmul.mubr.msk.f32.gmra.mrb[26].mxu1 %vm119_vm11, %v4650_v49  ;;  %472 = vmatprep.mubr.f32.mxu0 %v471_v0  ;;  %v486_v0 = vand.u32 4294901760, %v485_v36  ;;  %v1986_v36 = vsel %vm123_vm14, 1.0, %v4644_v47  ;;  %v3911_v8 = vsub.f32 %v1987_v14, %v1987_v14  ;;  %v4694_v47 = vand.u32 4294901760, %v3835_v32 }
  0xcc   :  { %2016 = vmatprep.mubr.msk.f32.mxu1 %vm122_vm13, %v4650_v49  ;;  %v3923_v21 = vsub.f32 %v1986_v36, %v1986_v36  ;;  %v521_v45 = vsub.f32 %v3865_v48, %v520_v1  ;;  %v4697_v36 = vand.u32 4294901760, %v3400_v50 }
  0xcd   :  { %v544_v11 = vand.u32 4294901760, %v3911_v8 }
  0xce   :  { %478 = vmatmul.mubr.f32.gmra.mrb[20].mxu0 %v477_v54  ;;  %v506_v54 = vsub.f32 %v3843_v18, %v4607_v57 }
  0xcf   :  { %2017 = vmatmul.mubr.msk.f32.gmra.mrb[28].mxu1 %vm121_vm12, %v4650_v49  ;;  %487 = vmatprep.mubr.f32.mxu0 %v486_v0  ;;  %v515_v0 = vsub.f32 %v3835_v32, %v4694_v47  ;;  %v4611_v47 = vand.u32 4294901760, %v3905_v63 }
  0xd0   :  { %2018 = vmatprep.mubr.msk.f32.mxu1 %vm124_vm15, %v4650_v49  ;;  %v507_v14 = vand.u32 4294901760, %v506_v54  ;;  %v522_v54 = vand.u32 4294901760, %v521_v45  ;;  %v4699_v45 = vand.u32 4294901760, %v3412_v55 }
  0xd1   :  { %v516_v57 = vand.u32 4294901760, %v515_v0  ;;  %v550_v0 = vand.u32 4294901760, %v3923_v21 }
  0xd2   :  { %493 = vmatmul.mubr.f32.gmra.mrb[22].mxu0 %v492_v23  ;;  %v530_v23 = vsub.f32 %v3883_v27, %v4610_v15 }
  0xd3   :  { %2019 = vmatmul.mubr.msk.f32.gmra.mrb[30].mxu1 %vm123_vm14, %v4650_v49  ;;  %502 = vmatprep.mubr.f32.mxu0 %v501_v20  ;;  %v4696_v20 = vand.u32 4294901760, %v3360_v3 }
  0xd4   :  { %1267 = vmatprep.mubr.f32.mxu1 %v4695_v41  ;;  %v536_v41 = vsub.f32 %v3905_v63, %v4611_v47  ;;  %v531_v15 = vand.u32 4294901760, %v530_v23  ;;  %v4700_v23 = vld [vmem:[#allocation16_spill] sm:$0xff]  ;;  %v4701_v47 = vld [vmem:[#allocation21_spill] sm:$0xff] }
  0xd6   :  { %508 = vmatmul.mubr.f32.gmra.mrb[24].mxu0 %v507_v14  ;;  %v545_v14 = vsub.f32 %v3911_v8, %v544_v11 }
  0xd7   :  { %1271 = vmatmul.mubr.f32.vlgmr.msra.gmra.mrb[32].mxu1 %v4696_v20  ;;  %517 = vmatprep.mubr.f32.mxu0 %v516_v57  ;;  %v4698_v57 = vand.u32 4294901760, %v3402_v44  ;;  %v537_v20 = vand.u32 4294901760, %v536_v41  ;;  %v4704_v41 = vld [vmem:[#allocation22_spill] sm:$0xff] }
  0xd8   :  { %1278 = vmatprep.mubr.f32.mxu1 %v4697_v36  ;;  %2727 = vmatpush3.bf16.msra.mxu1 %v2991_v9  ;;  %v551_v9 = vsub.f32 %v3923_v21, %v550_v0  ;;  %v546_v36 = vand.u32 4294901760, %v545_v14  ;;  %v4707_v14 = vld [vmem:[#allocation8_spill] sm:$0xff] }
  0xd9   :  { %2729 = vmatprep.subr.bf16.mxu1 %v3011_v12  ;;  %v4702_v12 = vand.u32 4294901760, %v3414_v46 }
  0xda   :  { %523 = vmatmul.mubr.f32.gmra.mrb[26].mxu0 %v522_v54  ;;  %v552_v54 = vand.u32 4294901760, %v551_v9  ;;  %v4710_v9 = vand.u32 4294901760, %v2902_v26 }
  0xdb   :  { %1282 = vmatmul.mubr.f32.gmra.mrb[34].mxu1 %v4698_v57  ;;  %532 = vmatprep.mubr.f32.mxu0 %v531_v15  ;;  %v4703_v15 = vand.u32 4294901760, %v3444_v43  ;;  %v4705_v57 = vand.u32 4294901760, %v3485_v60 }
  0xdc   :  { %1289 = vmatprep.mubr.f32.mxu1 %v4699_v45  ;;  %2731 = vmatpush3.bf16.msra.mxu1 %v4700_v23  ;;  %v4708_v45 = vand.u32 4294901760, %v4707_v14  ;;  %v4709_v23 = vand.u32 4294901760, %v3529_v59  ;;  %v4720_v14 = vand.u32 4294901760, %v3568_v62 }
  0xdd   :  { %2733 = vmatprep.subr.bf16.mxu1 %v4701_v47  ;;  %v4706_v47 = vand.u32 4294901760, %v2892_v24  ;;  %v4716_v24 = vld [vmem:[#allocation10_spill] sm:$0xff] }
  0xde   :  { %538 = vmatmul.mubr.f32.gmra.mrb[28].mxu0 %v537_v20 }
  0xdf   :  { %1293 = vmatmul.mubr.f32.gmra.mrb[36].mxu1 %v4702_v12  ;;  %547 = vmatprep.mubr.f32.mxu0 %v546_v36  ;;  %v2694_v20 = vpack.c.bf16 %v4708_v45, %v4706_v47  ;;  %v4711_v36 = vld [vmem:[#allocation9_spill] sm:$0xff]  ;;  %v4721_v45 = vld [vmem:[#allocation12_spill] sm:$0xff] }
  0xe0   :  { %1300 = vmatprep.mubr.f32.mxu1 %v4703_v15  ;;  %2735 = vmatpush3.bf16.msra.mxu1 %v3122_v2  ;;  %v4712_v2 = vand.u32 4294901760, %v4711_v36  ;;  %v4713_v15 = vld [vmem:[#allocation25_spill] sm:$0xff] }
  0xe1   :  { %2737 = vmatprep.subr.bf16.mxu1 %v4704_v41  ;;  %v4717_v41 = vand.u32 4294901760, %v4716_v24 }
  0xe2   :  { %553 = vmatmul.mubr.f32.gmra.mrb[30].mxu0 %v552_v54  ;;  %v2696_v12 = vpack.c.bf16 %v4712_v2, %v4710_v9  ;;  %v4714_v54 = vld [vmem:[#allocation27_spill] sm:$0xff]  ;;  %v4723_v9 = vld [vmem:[#allocation13_spill] sm:$0xff]  ;;  %v4725_v2 = vld [vmem:[#allocation28_spill] sm:$0xff] }
  0xe3   :  { %1304 = vmatmul.mubr.f32.gmra.mrb[38].mxu1 %v4705_v57  ;;  %1025 = vmatprep.mubr.f32.mxu0 %v3364_v53  ;;  %v4715_v53 = vand.u32 4294901760, %v3547_v34  ;;  %v4718_v57 = vld [vmem:[#allocation11_spill] sm:$0xff]  ;;  %v4724_v36 = vand.u32 4294901760, %v4723_v9 }
  0xe4   :  { %1311 = vmatprep.mubr.f32.mxu1 %v4709_v23  ;;  %2739 = vmatpush3.bf16.msra.mxu1 %v4713_v15  ;;  %v4719_v47 = vand.u32 4294901760, %v4718_v57  ;;  %v4722_v23 = vand.u32 4294901760, %v4721_v45  ;;  %v4736_v45 = vld [vmem:[#allocation29_spill] sm:$0xff] }
  0xe5   :  { %2741 = vmatprep.subr.bf16.mxu1 %v4714_v54  ;;  %v4730_v54 = vld [vmem:[#allocation15_spill] sm:$0xff] }
  0xe6   :  { %1028 = vmatmul.mubr.f32.vlgmr.msra.gmra.mrb[32].mxu0 %v3360_v3  ;;  %v2698_v26 = vpack.c.bf16 %v4719_v47, %v4717_v41  ;;  %v2700_v3 = vpack.c.bf16 %v4724_v36, %v4722_v23  ;;  %v4732_v41 = vld [vmem:[#allocation17_spill] sm:$0xff]  ;;  %v4734_v47 = vld [vmem:[#allocation18_spill] sm:$0xff]  ;;  %v4739_v23 = vld [vmem:[#allocation19_spill] sm:$0xff] }
  0xe7   :  { %1315 = vmatmul.mubr.f32.gmra.mrb[40].mxu1 %v4715_v53  ;;  %2695 = vmatpush3.bf16.msra.mxu0 %v2694_v20  ;;  %v4727_v20 = vand.u32 4294901760, %v3596_v19  ;;  %v4731_v53 = vand.u32 4294901760, %v4730_v54  ;;  %v4733_v57 = vand.u32 4294901760, %v4732_v41  ;;  %v4740_v9 = vand.u32 4294901760, %v4739_v23  ;;  %v4741_v36 = vld [vmem:[#allocation20_spill] sm:$0xff] }
  0xe8   :  { %1034 = vmatprep.mubr.f32.mxu0 %v3400_v50  ;;  %2697 = vmatprep.subr.bf16.mxu0 %v2696_v12  ;;  %v4726_v50 = vand.u32 4294901760, %v3583_v56  ;;  %v4728_v12 = vld [vmem:[#allocation14_spill] sm:$0xff]  ;;  %v4748_v54 = vand.u32 4294901760, %v3145_v22  ;;  %v4758_v22 = vand.u32 4294901760, %v3663_v61  ;;  %v4762_v23 = vand.u32 4294901760, %v3223_v5  ;;  %v4768_v5 = vld [vmem:[#allocation31_spill] sm:$0xff] }
  0xe9   :  { %1322 = vmatprep.mubr.f32.mxu1 %v4720_v14  ;;  %2743 = vmatpush3.bf16.msra.mxu1 %v4725_v2  ;;  %v4729_v15 = vand.u32 4294901760, %v4728_v12  ;;  %v4735_v14 = vand.u32 4294901760, %v4734_v47 }
  0xea   :  { %1037 = vmatmul.mubr.f32.gmra.mrb[34].mxu0 %v3402_v44  ;;  %2745 = vmatprep.subr.bf16.mxu1 %v4736_v45  ;;  %v4760_v45 = vand.u32 4294901760, %v3195_v16  ;;  %v4766_v16 = vand.u32 4294901760, %v3230_v7  ;;  %v4774_v7 = vand.u32 4294901760, %v3264_v38  ;;  %v4781_v38 = vand.u32 4294901760, %v3883_v27 }
  0xeb   :  { %1326 = vmatmul.mubr.f32.gmra.mrb[42].mxu1 %v4726_v50  ;;  %1043 = vmatprep.mubr.f32.mxu0 %v3412_v55  ;;  %v2702_v24 = vpack.c.bf16 %v4731_v53, %v4729_v15  ;;  %v2704_v44 = vpack.c.bf16 %v4735_v14, %v4733_v57  ;;  %v4737_v55 = vand.u32 4294901760, %v3602_v17  ;;  %v4743_v50 = vld [vmem:[#allocation30_spill] sm:$0xff]  ;;  %v4747_v15 = vand.u32 4294901760, %v3641_v10  ;;  %v4749_v53 = vld [vmem:[#allocation23_spill] sm:$0xff] }
  0xec   :  { %2699 = vmatpush3.bf16.msra.mxu0 %v2698_v26  ;;  %1333 = vmatprep.mubr.f32.mxu1 %v4727_v20  ;;  %v4738_v26 = vand.u32 4294901760, %v3594_v35  ;;  %v4744_v20 = vand.u32 4294901760, %v3128_v6  ;;  %v4750_v6 = vand.u32 4294901760, %v4749_v53  ;;  %v4756_v14 = vld [vmem:[#allocation34_spill] sm:$0xff] }
  0xed   :  { %2701 = vmatprep.subr.bf16.mxu0 %v2700_v3  ;;  %v4742_v3 = vand.u32 4294901760, %v4741_v36  ;;  %2747 = vmatpush3.bf16.msra.mxu1 %v4743_v50  ;;  %v4767_v36 = vand.u32 4294901760, %v3238_v28  ;;  %v4775_v28 = vand.u32 4294901760, %v3266_v4  ;;  %v4780_v4 = vand.u32 4294901760, %v3835_v32 }
  0xee   :  { %1046 = vmatmul.mubr.f32.gmra.mrb[36].mxu0 %v3414_v46  ;;  %v4745_v46 = vand.u32 4294901760, %v3133_v58  ;;  %2749 = vmatprep.subr.bf16.mxu1 %v3271_v40  ;;  %v4751_v58 = vld [vmem:[#allocation33_spill] sm:$0xff]  ;;  %v4752_v40 = vld [vmem:[#allocation24_spill] sm:$0xff] }
  0xef   :  { %1337 = vmatmul.mubr.f32.gmra.mrb[44].mxu1 %v4737_v55  ;;  %1052 = vmatprep.mubr.f32.mxu0 %v3444_v43  ;;  %v2706_v2 = vpack.c.bf16 %v4742_v3, %v4740_v9  ;;  %v4746_v43 = vand.u32 4294901760, %v3614_v52  ;;  %v4753_v41 = vand.u32 4294901760, %v4752_v40  ;;  %v2718_v3 = vpack.c.bf16 %v4767_v36, %v4766_v16 }
  0xf0   :  { %1344 = vmatprep.mubr.f32.mxu1 %v4738_v26  ;;  %2703 = vmatpush3.bf16.msra.mxu0 %v2702_v24  ;;  %v2708_v12 = vpack.c.bf16 %v4745_v46, %v4744_v20  ;;  %v2710_v24 = vpack.c.bf16 %v4750_v6, %v4748_v54  ;;  %v4761_v26 = vld [vmem:[#allocation35_spill] sm:$0xff]  ;;  %v4772_v20 = vand.u32 4294901760, %v3762_v13  ;;  %v2722_v46 = vpack.c.bf16 %v4775_v28, %v4774_v7 }
  0xf1   :  { %2705 = vmatprep.subr.bf16.mxu0 %v2704_v44  ;;  %2751 = vmatpush3.bf16.msra.mxu1 %v4751_v58  ;;  %v4759_v44 = vand.u32 4294901760, %v3192_v42  ;;  %v4765_v42 = vand.u32 4294901760, %v3737_v33 }
  0xf2   :  { %1055 = vmatmul.mubr.f32.gmra.mrb[38].mxu0 %v3485_v60  ;;  %v4754_v60 = vld [vmem:[#allocation26_spill] sm:$0xff]  ;;  %2753 = vmatprep.subr.bf16.mxu1 %v4756_v14 }
  0xf3   :  { %1348 = vmatmul.mubr.f32.gmra.mrb[46].mxu1 %v4746_v43  ;;  %1061 = vmatprep.mubr.f32.mxu0 %v3529_v59  ;;  %v4755_v57 = vand.u32 4294901760, %v4754_v60  ;;  %v4757_v59 = vand.u32 4294901760, %v3672_v25  ;;  %v2714_v55 = vpack.c.bf16 %v4760_v45, %v4759_v44 }
  0xf4   :  { %1355 = vmatprep.mubr.f32.mxu1 %v4747_v15  ;;  %2707 = vmatpush3.bf16.msra.mxu0 %v2706_v2  ;;  %v4770_v2 = vld [vmem:[#allocation32_spill] sm:$0xff] }
  0xf5   :  { %2709 = vmatprep.subr.bf16.mxu0 %v2708_v12  ;;  %v2712_v47 = vpack.c.bf16 %v4755_v57, %v4753_v41  ;;  %2755 = vmatpush3.bf16.msra.mxu1 %v4761_v26  ;;  %v4771_v50 = vand.u32 4294901760, %v4770_v2  ;;  %v4776_v12 = vand.u32 4294901760, %v3796_v51 }
  0xf6   :  { %1064 = vmatmul.mubr.f32.gmra.mrb[40].mxu0 %v3547_v34  ;;  %v4763_v34 = vand.u32 4294901760, %v3226_v29  ;;  %v4769_v29 = vand.u32 4294901760, %v4768_v5 }
  0xf7   :  { %1359 = vmatmul.mubr.f32.gmra.mrb[48].mxu1 %v4757_v59  ;;  %1070 = vmatprep.mubr.f32.mxu0 %v3568_v62  ;;  %v4764_v62 = vand.u32 4294901760, %v3711_v39 }
  0xf8   :  { %1366 = vmatprep.mubr.f32.mxu1 %v4758_v22  ;;  %2711 = vmatpush3.bf16.msra.mxu0 %v2710_v24  ;;  %v2716_v9 = vpack.c.bf16 %v4763_v34, %v4762_v23 }
  0xf9   :  { %2713 = vmatprep.subr.bf16.mxu0 %v2712_v47 }
  0xfa   :  { %1073 = vmatmul.mubr.f32.gmra.mrb[42].mxu0 %v3583_v56  ;;  %v2720_v56 = vpack.c.bf16 %v4771_v50, %v4769_v29 }
  0xfb   :  { %1370 = vmatmul.mubr.f32.gmra.mrb[50].mxu1 %v4764_v62  ;;  %1079 = vmatprep.mubr.f32.mxu0 %v3596_v19  ;;  %v4773_v19 = vand.u32 4294901760, %v3760_v37 }
  0xfc   :  { %1377 = vmatprep.mubr.f32.mxu1 %v4765_v42  ;;  %2715 = vmatpush3.bf16.msra.mxu0 %v2714_v55 }
  0xfd   :  { %2717 = vmatprep.subr.bf16.mxu0 %v2716_v9 }
  0xfe   :  { %1082 = vmatmul.mubr.f32.gmra.mrb[44].mxu0 %v3602_v17  ;;  %v4777_v17 = vld [vmem:[#allocation51_spill] sm:$0xff] }
  0xff   :  { %1381 = vmatmul.mubr.f32.gmra.mrb[52].mxu1 %v4772_v20  ;;  %1088 = vmatprep.mubr.f32.mxu0 %v3594_v35  ;;  %v4778_v43 = vand.u32 4294901760, %v4777_v17  ;;  %v4779_v35 = vand.u32 4294901760, %v3843_v18 }
 0x100   :  { %1388 = vmatprep.mubr.f32.mxu1 %v4773_v19  ;;  %2719 = vmatpush3.bf16.msra.mxu0 %v2718_v3 }
 0x101   :  { %2721 = vmatprep.subr.bf16.mxu0 %v2720_v56 }
 0x102   :  { %1091 = vmatmul.mubr.f32.gmra.mrb[46].mxu0 %v3614_v52  ;;  %v4782_v52 = vand.u32 4294901760, %v3905_v63 }
 0x103   :  { %1392 = vmatmul.mubr.f32.gmra.mrb[54].mxu1 %v4776_v12  ;;  %1097 = vmatprep.mubr.f32.mxu0 %v3641_v10 }
 0x104   :  { %1399 = vmatprep.mubr.f32.mxu1 %v4778_v43  ;;  %2723 = vmatpush3.bf16.msra.mxu0 %v2722_v46 }
 0x106   :  { %1100 = vmatmul.mubr.f32.gmra.mrb[48].mxu0 %v3672_v25  ;;  %v4788_v25 = vld [vmem:[#allocation41_spill] sm:$0xff] }
 0x107   :  { %1403 = vmatmul.mubr.f32.gmra.mrb[56].mxu1 %v4779_v35  ;;  %1106 = vmatprep.mubr.f32.mxu0 %v3663_v61 }
 0x108   :  { %1410 = vmatprep.mubr.f32.mxu1 %v4780_v4 }
 0x10a   :  { %1109 = vmatmul.mubr.f32.gmra.mrb[50].mxu0 %v3711_v39  ;;  %v4790_v39 = vld [vmem:[#allocation42_spill] sm:$0xff] }
 0x10b   :  { %1414 = vmatmul.mubr.f32.gmra.mrb[58].mxu1 %v520_v1  ;;  %1115 = vmatprep.mubr.f32.mxu0 %v3737_v33 }
 0x10c   :  { %1421 = vmatprep.mubr.f32.mxu1 %v4781_v38 }
 0x10e   :  { %1118 = vmatmul.mubr.f32.gmra.mrb[52].mxu0 %v3762_v13 }
 0x10f   :  { %1425 = vmatmul.mubr.f32.gmra.mrb[60].mxu1 %v4782_v52  ;;  %1124 = vmatprep.mubr.f32.mxu0 %v3760_v37  ;;  %v4796_v37 = vld [vmem:[#allocation44_spill] sm:$0xff] }
 0x110   :  { %1432 = vmatprep.mubr.f32.mxu1 %v544_v11  ;;  %v4818_v11 = vld [vmem:[#allocation49_spill] sm:$0xff] }
 0x112   :  { %1127 = vmatmul.mubr.f32.gmra.mrb[54].mxu0 %v3796_v51  ;;  %v4804_v51 = vld [vmem:[#allocation46_spill] sm:$0xff] }
 0x113   :  { %1436 = vmatmul.mubr.f32.gmra.mrb[62].mxu1 %v550_v0  ;;  %1133 = vmatprep.mubr.f32.mxu0 %v4777_v17 }
 0x114   :  { %2052 = vmatprep.mubr.msk.f32.mxu1 %vm94_vm1, %v4650_v49 }
 0x116   :  { %1136 = vmatmul.mubr.f32.gmra.mrb[56].mxu0 %v3843_v18  ;;  %v4813_v18 = vld [vmem:[#allocation48_spill] sm:$0xff] }
 0x117   :  { %2053 = vmatmul.mubr.msk.f32.vlgmr.msra.gmra.mrb[64].mxu1 %vm93_vm0, %v4650_v49  ;;  %1142 = vmatprep.mubr.f32.mxu0 %v3835_v32  ;;  %v4808_v32 = vld [vmem:[#allocation47_spill] sm:$0xff] }
 0x118   :  { %2054 = vmatprep.mubr.msk.f32.mxu1 %vm96_vm5, %v4650_v49 }
 0x11a   :  { %1145 = vmatmul.mubr.f32.gmra.mrb[58].mxu0 %v3865_v48 }
 0x11b   :  { %2055 = vmatmul.mubr.msk.f32.gmra.mrb[66].mxu1 %vm95_vm4, %v4650_v49  ;;  %1151 = vmatprep.mubr.f32.mxu0 %v3883_v27  ;;  %v4799_v27 = vld [vmem:[#allocation45_spill] sm:$0xff] }
 0x11c   :  { %2056 = vmatprep.mubr.msk.f32.mxu1 %vm98_vm3, %v4650_v49 }
 0x11e   :  { %1154 = vmatmul.mubr.f32.gmra.mrb[60].mxu0 %v3905_v63 }
 0x11f   :  { %2057 = vmatmul.mubr.msk.f32.gmra.mrb[68].mxu1 %vm97_vm2, %v4650_v49  ;;  %1160 = vmatprep.mubr.f32.mxu0 %v3911_v8  ;;  %v4793_v8 = vld [vmem:[#allocation43_spill] sm:$0xff] }
 0x120   :  { %2058 = vmatprep.mubr.msk.f32.mxu1 %vm100_vm6, %v4650_v49 }
 0x122   :  { %1163 = vmatmul.mubr.f32.gmra.mrb[62].mxu0 %v3923_v21 }
 0x123   :  { %2059 = vmatmul.mubr.msk.f32.gmra.mrb[70].mxu1 %vm99_vm7, %v4650_v49  ;;  %2020 = vmatprep.mubr.msk.f32.mxu0 %vm94_vm1, %v4650_v49  ;;  %vm4791_vm1 = vcmp.eq.s32.totalorder %v3330_v31, %v4790_v39 }
 0x124   :  { %2060 = vmatprep.mubr.msk.f32.mxu1 %vm102_vm8, %v4650_v49 }
 0x126   :  { %2021 = vmatmul.mubr.msk.f32.vlgmr.msra.gmra.mrb[64].mxu0 %vm93_vm0, %v4650_v49  ;;  %vm4789_vm0 = vcmp.eq.s32.totalorder %v3327_v30, %v4788_v25 }
 0x127   :  { %2061 = vmatmul.mubr.msk.f32.gmra.mrb[72].mxu1 %vm101_vm9, %v4650_v49  ;;  %2022 = vmatprep.mubr.msk.f32.mxu0 %vm96_vm5, %v4650_v49  ;;  %vm4797_vm5 = vcmp.eq.s32.totalorder %v3330_v31, %v4796_v37 }
 0x128   :  { %2062 = vmatprep.mubr.msk.f32.mxu1 %vm104_vm10, %v4650_v49 }
 0x12a   :  { %2023 = vmatmul.mubr.msk.f32.gmra.mrb[66].mxu0 %vm95_vm4, %v4650_v49  ;;  %vm4792_vm4 = vcmp.eq.s32.totalorder %v3327_v30, %v4790_v39 }
 0x12b   :  { %2063 = vmatmul.mubr.msk.f32.gmra.mrb[74].mxu1 %vm4789_vm0, %v4650_v49  ;;  %2024 = vmatprep.mubr.msk.f32.mxu0 %vm98_vm3, %v4650_v49  ;;  %vm4794_vm3 = vcmp.eq.s32.totalorder %v3330_v31, %v4793_v8 }
 0x12c   :  { %2064 = vmatprep.mubr.msk.f32.mxu1 %vm4791_vm1, %v4650_v49 }
 0x12e   :  { %2025 = vmatmul.mubr.msk.f32.gmra.mrb[68].mxu0 %vm97_vm2, %v4650_v49  ;;  %vm4795_vm2 = vcmp.eq.s32.totalorder %v3327_v30, %v4793_v8 }
 0x12f   :  { %2065 = vmatmul.mubr.msk.f32.gmra.mrb[76].mxu1 %vm4792_vm4, %v4650_v49  ;;  %2026 = vmatprep.mubr.msk.f32.mxu0 %vm100_vm6, %v4650_v49  ;;  %vm4798_vm6 = vcmp.eq.s32.totalorder %v3327_v30, %v4796_v37 }
 0x130   :  { %2066 = vmatprep.mubr.msk.f32.mxu1 %vm4794_vm3, %v4650_v49 }
 0x132   :  { %2027 = vmatmul.mubr.msk.f32.gmra.mrb[70].mxu0 %vm99_vm7, %v4650_v49  ;;  %vm4800_vm7 = vcmp.eq.s32.totalorder %v3330_v31, %v4799_v27 }
 0x133   :  { %2067 = vmatmul.mubr.msk.f32.gmra.mrb[78].mxu1 %vm4795_vm2, %v4650_v49  ;;  %2028 = vmatprep.mubr.msk.f32.mxu0 %vm102_vm8, %v4650_v49  ;;  %vm4801_vm8 = vmmov %vm4789_vm0  ;;  %vm4809_vm2 = vcmp.eq.s32.totalorder %v3330_v31, %v4808_v32 }
 0x134   :  { %2068 = vmatprep.mubr.msk.f32.mxu1 %vm4797_vm5, %v4650_v49  ;;  %vm4803_vm0 = vmmov %vm4791_vm1  ;;  %vm4810_vm5 = vcmp.eq.s32.totalorder %v3327_v30, %v4793_v8 }
 0x135   :  { %vm4806_vm1 = vmmov %vm4792_vm4  ;;  %vm4807_vm4 = vcmp.eq.s32.totalorder %v3327_v30, %v4804_v51 }
 0x136   :  { %2029 = vmatmul.mubr.msk.f32.gmra.mrb[72].mxu0 %vm101_vm9, %v4650_v49  ;;  %vm4802_vm9 = vcmp.eq.s32.totalorder %v3327_v30, %v4799_v27 }
 0x137   :  { %2069 = vmatmul.mubr.msk.f32.gmra.mrb[80].mxu1 %vm4798_vm6, %v4650_v49  ;;  %2030 = vmatprep.mubr.msk.f32.mxu0 %vm104_vm10, %v4650_v49  ;;  %vm4805_vm10 = vcmp.eq.s32.totalorder %v3330_v31, %v4804_v51  ;;  %vm4811_vm6 = vcmp.eq.s32.totalorder %v3327_v30, %v4808_v32 }
 0x138   :  { %2070 = vmatprep.mubr.msk.f32.mxu1 %vm4800_vm7, %v4650_v49  ;;  %vm4812_vm7 = vcmp.eq.s32.totalorder %v3330_v31, %v4796_v37 }
 0x13a   :  { %2031 = vmatmul.mubr.msk.f32.gmra.mrb[74].mxu0 %vm4801_vm8, %v4650_v49  ;;  %vm4814_vm8 = vcmp.eq.s32.totalorder %v3330_v31, %v4813_v18 }
 0x13b   :  { %2071 = vmatmul.mubr.msk.f32.gmra.mrb[82].mxu1 %vm4802_vm9, %v4650_v49  ;;  %2032 = vmatprep.mubr.msk.f32.mxu0 %vm4803_vm0, %v4650_v49  ;;  %vm4815_vm9 = vcmp.eq.s32.totalorder %v3327_v30, %v4796_v37  ;;  %vm4816_vm0 = vcmp.eq.s32.totalorder %v3327_v30, %v4813_v18 }
 0x13c   :  { %2072 = vmatprep.mubr.msk.f32.mxu1 %vm4805_vm10, %v4650_v49  ;;  %vm4817_vm10 = vcmp.eq.s32.totalorder %v3330_v31, %v4799_v27 }
 0x13e   :  { %2033 = vmatmul.mubr.msk.f32.gmra.mrb[76].mxu0 %vm4806_vm1, %v4650_v49  ;;  %vm4819_vm1 = vcmp.eq.s32.totalorder %v3330_v31, %v4818_v11 }
 0x13f   :  { %2073 = vmatmul.mubr.msk.f32.gmra.mrb[84].mxu1 %vm4807_vm4, %v4650_v49  ;;  %2034 = vmatprep.mubr.msk.f32.mxu0 %vm4794_vm3, %v4650_v49  ;;  %vm4820_vm4 = vcmp.eq.s32.totalorder %v3327_v30, %v4799_v27  ;;  %vm4821_vm3 = vcmp.eq.s32.totalorder %v3330_v31, %v4804_v51 }
 0x140   :  { %2074 = vmatprep.mubr.msk.f32.mxu1 %vm4809_vm2, %v4650_v49  ;;  %vm4823_vm2 = vcmp.eq.s32.totalorder %v3327_v30, %v4804_v51 }
 0x142   :  { %2035 = vmatmul.mubr.msk.f32.gmra.mrb[78].mxu0 %vm4810_vm5, %v4650_v49  ;;  %vm4824_vm5 = vcmp.eq.s32.totalorder %v3330_v31, %v4808_v32 }
 0x143   :  { %2075 = vmatmul.mubr.msk.f32.gmra.mrb[86].mxu1 %vm4811_vm6, %v4650_v49  ;;  %2036 = vmatprep.mubr.msk.f32.mxu0 %vm4812_vm7, %v4650_v49  ;;  %vm4826_vm7 = vmmov %vm4814_vm8 }
 0x144   :  { %2076 = vmatprep.mubr.msk.f32.mxu1 %vm4814_vm8, %v4650_v49  ;;  %vm4827_vm8 = vmmov %vm4816_vm0 }
 0x146   :  { %2037 = vmatmul.mubr.msk.f32.gmra.mrb[80].mxu0 %vm4815_vm9, %v4650_v49  ;;  %vm4828_vm9 = vmmov %vm4819_vm1 }
 0x147   :  { %2077 = vmatmul.mubr.msk.f32.gmra.mrb[88].mxu1 %vm4816_vm0, %v4650_v49  ;;  %2038 = vmatprep.mubr.msk.f32.mxu0 %vm4817_vm10, %v4650_v49 }
 0x148   :  { %2078 = vmatprep.mubr.msk.f32.mxu1 %vm4819_vm1, %v4650_v49 }
 0x14a   :  { %2039 = vmatmul.mubr.msk.f32.gmra.mrb[82].mxu0 %vm4820_vm4, %v4650_v49 }
 0x14b   :  { %2079 = vmatmul.mubr.msk.f32.gmra.mrb[90].mxu1 %vm119_vm11, %v4650_v49  ;;  %2040 = vmatprep.mubr.msk.f32.mxu0 %vm4821_vm3, %v4650_v49 }
 0x14c   :  { %2080 = vmatprep.mubr.msk.f32.mxu1 %vm122_vm13, %v4650_v49 }
 0x14e   :  { %2041 = vmatmul.mubr.msk.f32.gmra.mrb[84].mxu0 %vm4823_vm2, %v4650_v49 }
 0x14f   :  { %2081 = vmatmul.mubr.msk.f32.gmra.mrb[92].mxu1 %vm121_vm12, %v4650_v49  ;;  %2042 = vmatprep.mubr.msk.f32.mxu0 %vm4824_vm5, %v4650_v49 }
 0x150   :  { %2082 = vmatprep.mubr.msk.f32.mxu1 %vm124_vm15, %v4650_v49 }
 0x152   :  { %2043 = vmatmul.mubr.msk.f32.gmra.mrb[86].mxu0 %vm4811_vm6, %v4650_v49 }
 0x153   :  { %2083 = vmatmul.mubr.msk.f32.gmra.mrb[94].mxu1 %vm123_vm14, %v4650_v49  ;;  %2044 = vmatprep.mubr.msk.f32.mxu0 %vm4826_vm7, %v4650_v49 }
 0x156   :  { %2045 = vmatmul.mubr.msk.f32.gmra.mrb[88].mxu0 %vm4827_vm8, %v4650_v49 }
 0x157   :  { %2046 = vmatprep.mubr.msk.f32.mxu0 %vm4828_vm9, %v4650_v49 }
 0x15a   :  { %2047 = vmatmul.mubr.msk.f32.gmra.mrb[90].mxu0 %vm119_vm11, %v4650_v49 }
 0x15b   :  { %2048 = vmatprep.mubr.msk.f32.mxu0 %vm122_vm13, %v4650_v49 }
 0x15e   :  { %2049 = vmatmul.mubr.msk.f32.gmra.mrb[92].mxu0 %vm121_vm12, %v4650_v49 }
 0x15f   :  { %2050 = vmatprep.mubr.msk.f32.mxu0 %vm124_vm15, %v4650_v49 }
 0x162   :  { %2051 = vmatmul.mubr.msk.f32.gmra.mrb[94].mxu0 %vm123_vm14, %v4650_v49 }
 0x16a   :  { %v2196_v21 = vpop.f32.mrb[0].mxu1 }
 0x16b   :  { %v2197_v0 = vpop.f32.mrb[1].mxu1 }
 0x16c   :  { %v2198_v15 = vadd.f32 %v2197_v0, %v2196_v21 }
 0x16e   :  { %v2199_v54 = vpop.f32.mrb[2].mxu1 }
 0x16f   :  { %v2200_v53 = vpop.f32.mrb[3].mxu1 }
 0x170   :  { %v2201_v6 = vadd.f32 %v2200_v53, %v2199_v54 }
 0x172   :  { %v2202_v24 = vpop.f32.mrb[4].mxu1 }
 0x173   :  { %v2203_v58 = vpop.f32.mrb[5].mxu1 }
 0x174   :  { %v2204_v40 = vadd.f32 %v2203_v58, %v2202_v24 }
 0x175   :  { %v2116_v57 = vpop.f32.mrb[0].mxu0 }
 0x176   :  { %v2205_v41 = vpop.f32.mrb[6].mxu1  ;;  %v2117_v31 = vpop.f32.mrb[1].mxu0 }
 0x177   :  { %v2206_v60 = vpop.f32.mrb[7].mxu1  ;;  %v2118_v14 = vadd.f32 %v2117_v31, %v2116_v57 }
 0x178   :  { %v2207_v47 = vadd.f32 %v2206_v60, %v2205_v41 }
 0x179   :  { %v4368_v44 = vadd.f32 %v2198_v15, %v2118_v14  ;;  %v2119_v49 = vpop.f32.mrb[2].mxu0 }
 0x17a   :  { %v2208_v59 = vpop.f32.mrb[8].mxu1  ;;  %v2120_v45 = vpop.f32.mrb[3].mxu0 }
 0x17b   :  { %v2209_v22 = vpop.f32.mrb[9].mxu1  ;;  %v2121_v55 = vadd.f32 %v2120_v45, %v2119_v49 }
 0x17c   :  { %v2210_v30 = vadd.f32 %v2209_v22, %v2208_v59 }
 0x17d   :  { %v4370_v34 = vadd.f32 %v2201_v6, %v2121_v55  ;;  %v2122_v9 = vpop.f32.mrb[4].mxu0 }
 0x17e   :  { %v2211_v26 = vpop.f32.mrb[10].mxu1  ;;  %v2123_v42 = vpop.f32.mrb[5].mxu0 }
 0x17f   :  { %v2212_v23 = vpop.f32.mrb[11].mxu1  ;;  %v2124_v16 = vadd.f32 %v2123_v42, %v2122_v9 }
 0x180   :  { %v2213_v62 = vadd.f32 %v2212_v23, %v2211_v26 }
 0x181   :  { %v4372_v5 = vadd.f32 %v2204_v40, %v2124_v16 }
 0x182   :  { %v2214_v36 = vpop.f32.mrb[12].mxu1  ;;  %v2125_v2 = vpop.f32.mrb[6].mxu0 }
 0x183   :  { %v2215_v3 = vpop.f32.mrb[13].mxu1  ;;  %v2126_v50 = vpop.f32.mrb[7].mxu0 }
 0x184   :  { %v2216_v29 = vadd.f32 %v2215_v3, %v2214_v36  ;;  %v2127_v20 = vadd.f32 %v2126_v50, %v2125_v2 }
 0x186   :  { %v2217_v56 = vpop.f32.mrb[14].mxu1  ;;  %v4374_v28 = vadd.f32 %v2207_v47, %v2127_v20 }
 0x187   :  { %v2218_v19 = vpop.f32.mrb[15].mxu1 }
 0x188   :  { %v2219_v7 = vadd.f32 %v2218_v19, %v2217_v56  ;;  %v2128_v46 = vpop.f32.mrb[8].mxu0 }
 0x189   :  { %v2129_v17 = vpop.f32.mrb[9].mxu0 }
 0x18a   :  { %v2220_v12 = vpop.f32.mrb[16].mxu1  ;;  %v2130_v35 = vadd.f32 %v2129_v17, %v2128_v46 }
 0x18b   :  { %v2221_v43 = vpop.f32.mrb[17].mxu1 }
 0x18c   :  { %v2222_v4 = vadd.f32 %v2221_v43, %v2220_v12  ;;  %v4376_v38 = vadd.f32 %v2210_v30, %v2130_v35 }
 0x18d   :  { %v2131_v52 = vpop.f32.mrb[10].mxu0 }
 0x18e   :  { %v2223_v33 = vpop.f32.mrb[18].mxu1  ;;  %v2132_v13 = vpop.f32.mrb[11].mxu0 }
 0x18f   :  { %v2224_v10 = vpop.f32.mrb[19].mxu1  ;;  %v2133_v48 = vadd.f32 %v2132_v13, %v2131_v52 }
 0x190   :  { %v2225_v61 = vadd.f32 %v2224_v10, %v2223_v33 }
 0x191   :  { %v4378_v25 = vadd.f32 %v2213_v62, %v2133_v48  ;;  %v2134_v39 = vpop.f32.mrb[12].mxu0 }
 0x192   :  { %v2226_v8 = vpop.f32.mrb[20].mxu1  ;;  %v2135_v37 = vpop.f32.mrb[13].mxu0 }
 0x193   :  { %v2227_v27 = vpop.f32.mrb[21].mxu1  ;;  %v2136_v51 = vadd.f32 %v2135_v37, %v2134_v39 }
 0x194   :  { %v2228_v32 = vadd.f32 %v2227_v27, %v2226_v8 }
 0x195   :  { %v4380_v18 = vadd.f32 %v2216_v29, %v2136_v51  ;;  %v2137_v11 = vpop.f32.mrb[14].mxu0 }
 0x196   :  { %v2229_v1 = vpop.f32.mrb[22].mxu1  ;;  %v2138_v63 = vpop.f32.mrb[15].mxu0 }
 0x197   :  { %v2230_v21 = vpop.f32.mrb[23].mxu1  ;;  %v2139_v0 = vadd.f32 %v2138_v63, %v2137_v11 }
 0x198   :  { %v2231_v15 = vadd.f32 %v2230_v21, %v2229_v1 }
 0x199   :  { %v4382_v54 = vadd.f32 %v2219_v7, %v2139_v0  ;;  %v2140_v53 = vpop.f32.mrb[16].mxu0 }
 0x19a   :  { %v2232_v6 = vpop.f32.mrb[24].mxu1  ;;  %v2141_v24 = vpop.f32.mrb[17].mxu0 }
 0x19b   :  { %v2233_v58 = vpop.f32.mrb[25].mxu1  ;;  %v2142_v40 = vadd.f32 %v2141_v24, %v2140_v53 }
 0x19c   :  { %v2234_v41 = vadd.f32 %v2233_v58, %v2232_v6 }
 0x19d   :  { %v4384_v60 = vadd.f32 %v2222_v4, %v2142_v40  ;;  %v2143_v57 = vpop.f32.mrb[18].mxu0 }
 0x19e   :  { %v2235_v47 = vpop.f32.mrb[26].mxu1  ;;  %v2144_v31 = vpop.f32.mrb[19].mxu0 }
 0x19f   :  { %v2236_v14 = vpop.f32.mrb[27].mxu1  ;;  %v2145_v59 = vadd.f32 %v2144_v31, %v2143_v57 }
 0x1a0   :  { %v2237_v22 = vadd.f32 %v2236_v14, %v2235_v47 }
 0x1a1   :  { %v4386_v49 = vadd.f32 %v2225_v61, %v2145_v59  ;;  %v2146_v30 = vpop.f32.mrb[20].mxu0 }
 0x1a2   :  { %v2238_v45 = vpop.f32.mrb[28].mxu1  ;;  %v2147_v55 = vpop.f32.mrb[21].mxu0 }
 0x1a3   :  { %v2239_v26 = vpop.f32.mrb[29].mxu1  ;;  %v2148_v23 = vadd.f32 %v2147_v55, %v2146_v30 }
 0x1a4   :  { %v2240_v9 = vadd.f32 %v2239_v26, %v2238_v45 }
 0x1a5   :  { %v4388_v62 = vadd.f32 %v2228_v32, %v2148_v23  ;;  %v2149_v42 = vpop.f32.mrb[22].mxu0 }
 0x1a6   :  { %v2241_v16 = vpop.f32.mrb[30].mxu1  ;;  %v2150_v36 = vpop.f32.mrb[23].mxu0 }
 0x1a7   :  { %v2242_v3 = vpop.f32.mrb[31].mxu1  ;;  %v2151_v29 = vadd.f32 %v2150_v36, %v2149_v42 }
 0x1a8   :  { %v2243_v2 = vadd.f32 %v2242_v3, %v2241_v16 }
 0x1a9   :  { %v4390_v50 = vadd.f32 %v2231_v15, %v2151_v29  ;;  %v2152_v56 = vpop.f32.mrb[24].mxu0 }
 0x1aa   :  { %v2356_v20 = vpop.f32.mrb[32].mxu1  ;;  %v2153_v19 = vpop.f32.mrb[25].mxu0 }
 0x1ab   :  { %v2357_v7 = vpop.f32.mrb[33].mxu1  ;;  %v2154_v46 = vadd.f32 %v2153_v19, %v2152_v56 }
 0x1ac   :  { %v2358_v12 = vadd.f32 %v2357_v7, %v2356_v20 }
 0x1ad   :  { %v4392_v17 = vadd.f32 %v2234_v41, %v2154_v46  ;;  %v2155_v43 = vpop.f32.mrb[26].mxu0 }
 0x1ae   :  { %v2359_v35 = vpop.f32.mrb[34].mxu1  ;;  %v2156_v4 = vpop.f32.mrb[27].mxu0 }
 0x1af   :  { %v2360_v52 = vpop.f32.mrb[35].mxu1  ;;  %v2157_v33 = vadd.f32 %v2156_v4, %v2155_v43 }
 0x1b0   :  { %v2361_v13 = vadd.f32 %v2360_v52, %v2359_v35 }
 0x1b1   :  { %v4394_v10 = vadd.f32 %v2237_v22, %v2157_v33  ;;  %v2158_v48 = vpop.f32.mrb[28].mxu0 }
 0x1b2   :  { %v2362_v61 = vpop.f32.mrb[36].mxu1  ;;  %v2159_v39 = vpop.f32.mrb[29].mxu0 }
 0x1b3   :  { %v2363_v8 = vpop.f32.mrb[37].mxu1  ;;  %v2160_v37 = vadd.f32 %v2159_v39, %v2158_v48 }
 0x1b4   :  { %v2364_v27 = vadd.f32 %v2363_v8, %v2362_v61 }
 0x1b5   :  { %v4396_v51 = vadd.f32 %v2240_v9, %v2160_v37  ;;  %v2161_v32 = vpop.f32.mrb[30].mxu0 }
 0x1b6   :  { %v2365_v11 = vpop.f32.mrb[38].mxu1  ;;  %v2162_v1 = vpop.f32.mrb[31].mxu0 }
 0x1b7   :  { %v2366_v63 = vpop.f32.mrb[39].mxu1  ;;  %v2163_v21 = vadd.f32 %v2162_v1, %v2161_v32 }
 0x1b8   :  { %v2367_v0 = vadd.f32 %v2366_v63, %v2365_v11 }
 0x1b9   :  { %v4398_v15 = vadd.f32 %v2243_v2, %v2163_v21  ;;  %v2276_v53 = vpop.f32.mrb[32].mxu0 }
 0x1ba   :  { %v2368_v6 = vpop.f32.mrb[40].mxu1  ;;  %v2277_v24 = vpop.f32.mrb[33].mxu0 }
 0x1bb   :  { %v2369_v58 = vpop.f32.mrb[41].mxu1  ;;  %v2278_v40 = vadd.f32 %v2277_v24, %v2276_v53 }
 0x1bc   :  { %v2370_v41 = vadd.f32 %v2369_v58, %v2368_v6 }
 0x1bd   :  { %v1030_v57 = vadd.f32 %v2278_v40, %v4368_v44  ;;  %v2279_v47 = vpop.f32.mrb[34].mxu0 }
 0x1be   :  { %v2371_v31 = vpop.f32.mrb[42].mxu1  ;;  %v2280_v14 = vpop.f32.mrb[35].mxu0 }
 0x1bf   :  { %v2372_v59 = vpop.f32.mrb[43].mxu1  ;;  %v2281_v22 = vadd.f32 %v2280_v14, %v2279_v47  ;;  %v4401_v45 = vadd.f32 %v2358_v12, %v1030_v57 }
 0x1c0   :  { %v2373_v30 = vadd.f32 %v2372_v59, %v2371_v31 }
 0x1c1   :  { %v1039_v55 = vadd.f32 %v2281_v22, %v4370_v34  ;;  %v2282_v26 = vpop.f32.mrb[36].mxu0 }
 0x1c2   :  { %v2374_v23 = vpop.f32.mrb[44].mxu1  ;;  %v2283_v9 = vpop.f32.mrb[37].mxu0 }
 0x1c3   :  { %v2375_v42 = vpop.f32.mrb[45].mxu1  ;;  %v2284_v16 = vadd.f32 %v2283_v9, %v2282_v26  ;;  %v4404_v3 = vadd.f32 %v2361_v13, %v1039_v55 }
 0x1c4   :  { %v2376_v36 = vadd.f32 %v2375_v42, %v2374_v23 }
 0x1c5   :  { %v1048_v44 = vadd.f32 %v2284_v16, %v4372_v5  ;;  %v2285_v29 = vpop.f32.mrb[38].mxu0 }
 0x1c6   :  { %v2377_v2 = vpop.f32.mrb[46].mxu1  ;;  %v2286_v56 = vpop.f32.mrb[39].mxu0 }
 0x1c7   :  { %v2378_v20 = vpop.f32.mrb[47].mxu1  ;;  %v2287_v19 = vadd.f32 %v2286_v56, %v2285_v29  ;;  %v4407_v46 = vadd.f32 %v2364_v27, %v1048_v44 }
 0x1c8   :  { %v2379_v7 = vadd.f32 %v2378_v20, %v2377_v2 }
 0x1c9   :  { %v1057_v34 = vadd.f32 %v2287_v19, %v4374_v28  ;;  %v2288_v12 = vpop.f32.mrb[40].mxu0 }
 0x1ca   :  { %v2380_v43 = vpop.f32.mrb[48].mxu1  ;;  %v2289_v35 = vpop.f32.mrb[41].mxu0 }
 0x1cb   :  { %v2381_v4 = vpop.f32.mrb[49].mxu1  ;;  %v2290_v52 = vadd.f32 %v2289_v35, %v2288_v12  ;;  %v4410_v13 = vadd.f32 %v2367_v0, %v1057_v34 }
 0x1cc   :  { %v2382_v33 = vadd.f32 %v2381_v4, %v2380_v43 }
 0x1cd   :  { %v1066_v5 = vadd.f32 %v2290_v52, %v4376_v38  ;;  %v2291_v48 = vpop.f32.mrb[42].mxu0 }
 0x1ce   :  { %v2383_v61 = vpop.f32.mrb[50].mxu1  ;;  %v2292_v39 = vpop.f32.mrb[43].mxu0 }
 0x1cf   :  { %v2384_v8 = vpop.f32.mrb[51].mxu1  ;;  %v2293_v37 = vadd.f32 %v2292_v39, %v2291_v48  ;;  %v4413_v27 = vadd.f32 %v2370_v41, %v1066_v5 }
 0x1d0   :  { %v2385_v32 = vadd.f32 %v2384_v8, %v2383_v61 }
 0x1d1   :  { %v1075_v28 = vadd.f32 %v2293_v37, %v4378_v25  ;;  %v2294_v11 = vpop.f32.mrb[44].mxu0 }
 0x1d2   :  { %v2386_v1 = vpop.f32.mrb[52].mxu1  ;;  %v2295_v63 = vpop.f32.mrb[45].mxu0 }
 0x1d3   :  { %v2387_v21 = vpop.f32.mrb[53].mxu1  ;;  %v2296_v53 = vadd.f32 %v2295_v63, %v2294_v11  ;;  %v4416_v0 = vadd.f32 %v2373_v30, %v1075_v28 }
 0x1d4   :  { %v2388_v6 = vadd.f32 %v2387_v21, %v2386_v1 }
 0x1d5   :  { %v1084_v38 = vadd.f32 %v2296_v53, %v4380_v18  ;;  %v2297_v24 = vpop.f32.mrb[46].mxu0 }
 0x1d6   :  { %v2389_v58 = vpop.f32.mrb[54].mxu1  ;;  %v2298_v40 = vpop.f32.mrb[47].mxu0 }
 0x1d7   :  { %v2390_v57 = vpop.f32.mrb[55].mxu1  ;;  %v2299_v47 = vadd.f32 %v2298_v40, %v2297_v24  ;;  %v4419_v41 = vadd.f32 %v2376_v36, %v1084_v38 }
 0x1d8   :  { %v2391_v31 = vadd.f32 %v2390_v57, %v2389_v58 }
 0x1d9   :  { %v1093_v25 = vadd.f32 %v2299_v47, %v4382_v54  ;;  %v2300_v14 = vpop.f32.mrb[48].mxu0 }
 0x1da   :  { %v2392_v59 = vpop.f32.mrb[56].mxu1  ;;  %v2301_v22 = vpop.f32.mrb[49].mxu0 }
 0x1db   :  { %v2393_v55 = vpop.f32.mrb[57].mxu1  ;;  %v2302_v26 = vadd.f32 %v2301_v22, %v2300_v14  ;;  %v4422_v30 = vadd.f32 %v2379_v7, %v1093_v25 }
 0x1dc   :  { %v2394_v23 = vadd.f32 %v2393_v55, %v2392_v59 }
 0x1dd   :  { %v1102_v18 = vadd.f32 %v2302_v26, %v4384_v60  ;;  %v2303_v9 = vpop.f32.mrb[50].mxu0 }
 0x1de   :  { %v2395_v42 = vpop.f32.mrb[58].mxu1  ;;  %v2304_v16 = vpop.f32.mrb[51].mxu0 }
 0x1df   :  { %v2396_v44 = vpop.f32.mrb[59].mxu1  ;;  %v2305_v29 = vadd.f32 %v2304_v16, %v2303_v9  ;;  %v4425_v36 = vadd.f32 %v2382_v33, %v1102_v18 }
 0x1e0   :  { %v2397_v2 = vadd.f32 %v2396_v44, %v2395_v42 }
 0x1e1   :  { %v1111_v54 = vadd.f32 %v2305_v29, %v4386_v49  ;;  %v2306_v56 = vpop.f32.mrb[52].mxu0 }
 0x1e2   :  { %v2398_v20 = vpop.f32.mrb[60].mxu1  ;;  %v2307_v19 = vpop.f32.mrb[53].mxu0 }
 0x1e3   :  { %v2399_v34 = vpop.f32.mrb[61].mxu1  ;;  %v2308_v12 = vadd.f32 %v2307_v19, %v2306_v56  ;;  %v4428_v7 = vadd.f32 %v2385_v32, %v1111_v54 }
 0x1e4   :  { %v2400_v43 = vadd.f32 %v2399_v34, %v2398_v20 }
 0x1e5   :  { %v1120_v60 = vadd.f32 %v2308_v12, %v4388_v62  ;;  %v2309_v35 = vpop.f32.mrb[54].mxu0 }
 0x1e6   :  { %v2401_v4 = vpop.f32.mrb[62].mxu1  ;;  %v2310_v52 = vpop.f32.mrb[55].mxu0 }
 0x1e7   :  { %v2402_v5 = vpop.f32.mrb[63].mxu1  ;;  %v2311_v48 = vadd.f32 %v2310_v52, %v2309_v35  ;;  %v4431_v33 = vadd.f32 %v2388_v6, %v1120_v60 }
 0x1e8   :  { %v2403_v61 = vadd.f32 %v2402_v5, %v2401_v4 }
 0x1e9   :  { %v1129_v49 = vadd.f32 %v2311_v48, %v4390_v50  ;;  %v2312_v39 = vpop.f32.mrb[56].mxu0 }
 0x1ea   :  { %v2516_v8 = vpop.f32.mrb[64].mxu1  ;;  %v2313_v37 = vpop.f32.mrb[57].mxu0 }
 0x1eb   :  { %v2517_v28 = vpop.f32.mrb[65].mxu1  ;;  %v2314_v11 = vadd.f32 %v2313_v37, %v2312_v39  ;;  %v4434_v32 = vadd.f32 %v2391_v31, %v1129_v49 }
 0x1ec   :  { %v2518_v1 = vadd.f32 %v2517_v28, %v2516_v8 }
 0x1ed   :  { %v1138_v62 = vadd.f32 %v2314_v11, %v4392_v17  ;;  %v2315_v63 = vpop.f32.mrb[58].mxu0 }
 0x1ee   :  { %v2519_v21 = vpop.f32.mrb[66].mxu1  ;;  %v2316_v53 = vpop.f32.mrb[59].mxu0 }
 0x1ef   :  { %v2520_v38 = vpop.f32.mrb[67].mxu1  ;;  %v2317_v24 = vadd.f32 %v2316_v53, %v2315_v63  ;;  %v4437_v6 = vadd.f32 %v2394_v23, %v1138_v62 }
 0x1f0   :  { %v2521_v58 = vadd.f32 %v2520_v38, %v2519_v21 }
 0x1f1   :  { %v1147_v50 = vadd.f32 %v2317_v24, %v4394_v10  ;;  %v2318_v40 = vpop.f32.mrb[60].mxu0 }
 0x1f2   :  { %v2522_v57 = vpop.f32.mrb[68].mxu1  ;;  %v2319_v47 = vpop.f32.mrb[61].mxu0 }
 0x1f3   :  { %v2523_v25 = vpop.f32.mrb[69].mxu1  ;;  %v2320_v14 = vadd.f32 %v2319_v47, %v2318_v40  ;;  %v4440_v31 = vadd.f32 %v2397_v2, %v1147_v50 }
 0x1f4   :  { %v2524_v59 = vadd.f32 %v2523_v25, %v2522_v57 }
 0x1f5   :  { %v1156_v17 = vadd.f32 %v2320_v14, %v4396_v51  ;;  %v2321_v22 = vpop.f32.mrb[62].mxu0 }
 0x1f6   :  { %v2525_v55 = vpop.f32.mrb[70].mxu1  ;;  %v2322_v26 = vpop.f32.mrb[63].mxu0 }
 0x1f7   :  { %v2526_v18 = vpop.f32.mrb[71].mxu1  ;;  %v2323_v9 = vadd.f32 %v2322_v26, %v2321_v22  ;;  %v4443_v23 = vadd.f32 %v2400_v43, %v1156_v17 }
 0x1f8   :  { %v2527_v42 = vadd.f32 %v2526_v18, %v2525_v55 }
 0x1f9   :  { %v1165_v10 = vadd.f32 %v2323_v9, %v4398_v15  ;;  %v2436_v16 = vpop.f32.mrb[64].mxu0 }
 0x1fa   :  { %v2528_v44 = vpop.f32.mrb[72].mxu1  ;;  %v2437_v29 = vpop.f32.mrb[65].mxu0 }
 0x1fb   :  { %v2529_v54 = vpop.f32.mrb[73].mxu1  ;;  %v2438_v56 = vadd.f32 %v2437_v29, %v2436_v16  ;;  %v4446_v2 = vadd.f32 %v2403_v61, %v1165_v10 }
 0x1fc   :  { %v2530_v20 = vadd.f32 %v2529_v54, %v2528_v44 }
 0x1fd   :  { %v1606_v51 = vadd.f32 %v2438_v56, %v4401_v45  ;;  %v2439_v19 = vpop.f32.mrb[66].mxu0 }
 0x1fe   :  { %v2531_v34 = vpop.f32.mrb[74].mxu1  ;;  %v2440_v12 = vpop.f32.mrb[67].mxu0 }
 0x1ff   :  { %v2532_v60 = vpop.f32.mrb[75].mxu1  ;;  %v1815_v35 = vadd.f32 %v2518_v1, %v1606_v51  ;;  %v2441_v4 = vadd.f32 %v2440_v12, %v2439_v19 }
 0x200   :  { %v2533_v43 = vadd.f32 %v2532_v60, %v2531_v34 }
 0x201   :  { %1923 = vst [vmem:[#allocation5] sm:$0xff] %v1815_v35  ;;  %v1613_v15 = vadd.f32 %v2441_v4, %v4404_v3  ;;  %v2442_v52 = vpop.f32.mrb[68].mxu0 }
 0x202   :  { %v2534_v5 = vpop.f32.mrb[76].mxu1  ;;  %v2443_v48 = vpop.f32.mrb[69].mxu0 }
 0x203   :  { %v2535_v49 = vpop.f32.mrb[77].mxu1  ;;  %v1822_v39 = vadd.f32 %v2521_v58, %v1613_v15  ;;  %v2444_v8 = vadd.f32 %v2443_v48, %v2442_v52 }
 0x204   :  { %v2536_v61 = vadd.f32 %v2535_v49, %v2534_v5 }
 0x205   :  { %1924 = vst [vmem:[#allocation5 + $0x8] sm:$0xff] %v1822_v39  ;;  %v1620_v45 = vadd.f32 %v2444_v8, %v4407_v46  ;;  %v2445_v37 = vpop.f32.mrb[70].mxu0 }
 0x206   :  { %v2537_v28 = vpop.f32.mrb[78].mxu1  ;;  %v2446_v11 = vpop.f32.mrb[71].mxu0 }
 0x207   :  { %v2538_v62 = vpop.f32.mrb[79].mxu1  ;;  %v1829_v1 = vadd.f32 %v2524_v59, %v1620_v45  ;;  %v2447_v63 = vadd.f32 %v2446_v11, %v2445_v37 }
 0x208   :  { %v2539_v21 = vadd.f32 %v2538_v62, %v2537_v28 }
 0x209   :  { %1925 = vst [vmem:[#allocation5 + $0x10] sm:$0xff] %v1829_v1  ;;  %v1627_v3 = vadd.f32 %v2447_v63, %v4410_v13  ;;  %v2448_v53 = vpop.f32.mrb[72].mxu0 }
 0x20a   :  { %v2540_v38 = vpop.f32.mrb[80].mxu1  ;;  %v2449_v24 = vpop.f32.mrb[73].mxu0 }
 0x20b   :  { %v2541_v50 = vpop.f32.mrb[81].mxu1  ;;  %v1836_v58 = vadd.f32 %v2527_v42, %v1627_v3  ;;  %v2450_v40 = vadd.f32 %v2449_v24, %v2448_v53 }
 0x20c   :  { %v2542_v57 = vadd.f32 %v2541_v50, %v2540_v38 }
 0x20d   :  { %1926 = vst [vmem:[#allocation5 + $0x18] sm:$0xff] %v1836_v58  ;;  %v1634_v46 = vadd.f32 %v2450_v40, %v4413_v27  ;;  %v2451_v47 = vpop.f32.mrb[74].mxu0 }
 0x20e   :  { %v2543_v25 = vpop.f32.mrb[82].mxu1  ;;  %v2452_v14 = vpop.f32.mrb[75].mxu0 }
 0x20f   :  { %v2544_v17 = vpop.f32.mrb[83].mxu1  ;;  %v1843_v59 = vadd.f32 %v2530_v20, %v1634_v46  ;;  %v2453_v22 = vadd.f32 %v2452_v14, %v2451_v47 }
 0x210   :  { %v2545_v55 = vadd.f32 %v2544_v17, %v2543_v25 }
 0x211   :  { %1927 = vst [vmem:[#allocation5 + $0x20] sm:$0xff] %v1843_v59  ;;  %v1641_v13 = vadd.f32 %v2453_v22, %v4416_v0  ;;  %v2454_v26 = vpop.f32.mrb[76].mxu0 }
 0x212   :  { %v2546_v18 = vpop.f32.mrb[84].mxu1  ;;  %v2455_v9 = vpop.f32.mrb[77].mxu0 }
 0x213   :  { %v2547_v10 = vpop.f32.mrb[85].mxu1  ;;  %v1850_v42 = vadd.f32 %v2533_v43, %v1641_v13  ;;  %v2456_v16 = vadd.f32 %v2455_v9, %v2454_v26 }
 0x214   :  { %v2548_v44 = vadd.f32 %v2547_v10, %v2546_v18 }
 0x215   :  { %1928 = vst [vmem:[#allocation5 + $0x28] sm:$0xff] %v1850_v42  ;;  %v1648_v27 = vadd.f32 %v2456_v16, %v4419_v41  ;;  %v2457_v29 = vpop.f32.mrb[78].mxu0 }
 0x216   :  { %v2549_v54 = vpop.f32.mrb[86].mxu1  ;;  %v2458_v56 = vpop.f32.mrb[79].mxu0 }
 0x217   :  { %v2550_v51 = vpop.f32.mrb[87].mxu1  ;;  %v1857_v20 = vadd.f32 %v2536_v61, %v1648_v27  ;;  %v2459_v19 = vadd.f32 %v2458_v56, %v2457_v29 }
 0x218   :  { %v2551_v34 = vadd.f32 %v2550_v51, %v2549_v54 }
 0x219   :  { %1929 = vst [vmem:[#allocation5 + $0x30] sm:$0xff] %v1857_v20  ;;  %v1655_v0 = vadd.f32 %v2459_v19, %v4422_v30  ;;  %v2460_v12 = vpop.f32.mrb[80].mxu0 }
 0x21a   :  { %v2552_v60 = vpop.f32.mrb[88].mxu1  ;;  %v2461_v35 = vpop.f32.mrb[81].mxu0 }
 0x21b   :  { %v2553_v4 = vpop.f32.mrb[89].mxu1  ;;  %v1864_v43 = vadd.f32 %v2539_v21, %v1655_v0  ;;  %v2462_v15 = vadd.f32 %v2461_v35, %v2460_v12 }
 0x21c   :  { %v2554_v52 = vadd.f32 %v2553_v4, %v2552_v60 }
 0x21d   :  { %1930 = vst [vmem:[#allocation5 + $0x38] sm:$0xff] %v1864_v43  ;;  %v1662_v41 = vadd.f32 %v2462_v15, %v4425_v36  ;;  %v2463_v5 = vpop.f32.mrb[82].mxu0 }
 0x21e   :  { %v2555_v48 = vpop.f32.mrb[90].mxu1  ;;  %v2464_v49 = vpop.f32.mrb[83].mxu0 }
 0x21f   :  { %v2556_v39 = vpop.f32.mrb[91].mxu1  ;;  %v1871_v8 = vadd.f32 %v2542_v57, %v1662_v41  ;;  %v2465_v61 = vadd.f32 %v2464_v49, %v2463_v5 }
 0x220   :  { %v2557_v45 = vadd.f32 %v2556_v39, %v2555_v48 }
 0x221   :  { %1931 = vst [vmem:[#allocation5 + $0x40] sm:$0xff] %v1871_v8  ;;  %v1669_v30 = vadd.f32 %v2465_v61, %v4428_v7  ;;  %v2466_v37 = vpop.f32.mrb[84].mxu0 }
 0x222   :  { %v2558_v28 = vpop.f32.mrb[92].mxu1  ;;  %v2467_v11 = vpop.f32.mrb[85].mxu0 }
 0x223   :  { %v2559_v62 = vpop.f32.mrb[93].mxu1  ;;  %v1878_v1 = vadd.f32 %v2545_v55, %v1669_v30  ;;  %v2468_v63 = vadd.f32 %v2467_v11, %v2466_v37 }
 0x224   :  { %v2560_v21 = vadd.f32 %v2559_v62, %v2558_v28 }
 0x225   :  { %1932 = vst [vmem:[#allocation5 + $0x48] sm:$0xff] %v1878_v1  ;;  %v1676_v36 = vadd.f32 %v2468_v63, %v4431_v33  ;;  %v2469_v3 = vpop.f32.mrb[86].mxu0 }
 0x226   :  { %v2561_v53 = vpop.f32.mrb[94].mxu1  ;;  %v2470_v38 = vpop.f32.mrb[87].mxu0 }
 0x227   :  { %v2562_v24 = vpop.f32.mrb[95].mxu1  ;;  %v1885_v50 = vadd.f32 %v2548_v44, %v1676_v36  ;;  %v2471_v58 = vadd.f32 %v2470_v38, %v2469_v3 }
 0x228   :  { %v2563_v40 = vadd.f32 %v2562_v24, %v2561_v53 }
 0x229   :  { %1933 = vst [vmem:[#allocation5 + $0x50] sm:$0xff] %v1885_v50  ;;  %v1683_v7 = vadd.f32 %v2471_v58, %v4434_v32  ;;  %v2472_v57 = vpop.f32.mrb[88].mxu0 }
 0x22a   :  { %v2473_v46 = vpop.f32.mrb[89].mxu0 }
 0x22b   :  { %v1892_v47 = vadd.f32 %v2551_v34, %v1683_v7  ;;  %v2474_v25 = vadd.f32 %v2473_v46, %v2472_v57 }
 0x22d   :  { %1934 = vst [vmem:[#allocation5 + $0x58] sm:$0xff] %v1892_v47  ;;  %v1690_v14 = vadd.f32 %v2474_v25, %v4437_v6  ;;  %v2475_v17 = vpop.f32.mrb[90].mxu0 }
 0x22e   :  { %v2476_v59 = vpop.f32.mrb[91].mxu0 }
 0x22f   :  { %v1899_v33 = vadd.f32 %v2554_v52, %v1690_v14  ;;  %v2477_v22 = vadd.f32 %v2476_v59, %v2475_v17 }
 0x231   :  { %1935 = vst [vmem:[#allocation5 + $0x60] sm:$0xff] %v1899_v33  ;;  %v1697_v55 = vadd.f32 %v2477_v22, %v4440_v31  ;;  %v2478_v13 = vpop.f32.mrb[92].mxu0 }
 0x232   :  { %v2479_v26 = vpop.f32.mrb[93].mxu0 }
 0x233   :  { %v1906_v18 = vadd.f32 %v2557_v45, %v1697_v55  ;;  %v2480_v9 = vadd.f32 %v2479_v26, %v2478_v13 }
 0x235   :  { %1936 = vst [vmem:[#allocation5 + $0x68] sm:$0xff] %v1906_v18  ;;  %v1704_v32 = vadd.f32 %v2480_v9, %v4443_v23  ;;  %v2481_v10 = vpop.f32.mrb[94].mxu0 }
 0x236   :  { %v2482_v42 = vpop.f32.mrb[95].mxu0 }
 0x237   :  { %v1913_v16 = vadd.f32 %v2560_v21, %v1704_v32  ;;  %v2483_v44 = vadd.f32 %v2482_v42, %v2481_v10 }
 0x239   :  { %1937 = vst [vmem:[#allocation5 + $0x70] sm:$0xff] %v1913_v16  ;;  %v1711_v6 = vadd.f32 %v2483_v44, %v4446_v2 }
 0x23b   :  { %v1920_v27 = vadd.f32 %v2563_v40, %v1711_v6 }
 0x23d   :  { %1938 = vst [vmem:[#allocation5 + $0x78] sm:$0xff] %v1920_v27 }
 0x23e   :  { %2798 = shalt.err (!%p2795_p12)
}
 0x23f   :  { %s2799_s3 = scalar_lea.hbm %s4481_s2, 2048 }
 0x240   :  { %p2800_p13 = scmp.ne.s32.totalorder %s4481_s2, %s2799_s3  ;;  %p2803_p0 = scmp.lt.u32.totalorder %s2799_s3, %s4481_s2 }
 0x242   :  { %p2805_p1 = pnand %p2803_p0, %p2800_p13 }
 0x244   :  { %2808 = shalt.err (!%p2805_p1)
}
 0x245   :  { %1950 = dma.vmem_to_hbm [thread:$0]  %s1945_s28, 2048, %s4481_s2, [#allocation4], %s2814_s19, %s2814_s19, %s2815_s20  }
 0x246   :  { %2811 = dma.done.wait [#allocation4], 2048  }
 0x247   :  { %2812 = vsyncadd [#allocation4], 4294965248 }
 0x248   :  { %1954 = vsyncpa [#allocation3], 1 }
 0x249   :  { %1955 = vsyncpa [#allocation4], 1 }

</bundles_post_ra>
